<compile_context>
chip_gen: v6e
topology: v6e:2x2x1
jax: 0.10.0
libtpu: 0.0.40
codegen_flags: <defaults>
</compile_context>

<pallas_src>
import functools

import jax
import jax.numpy as jnp
from jax import lax
from jax.experimental import pallas as pl
from jax.experimental.pallas import tpu as pltpu

DIM_EMB = 300            # GloVe embedding width (module constant)
DIM_EMB_PAD = 384        # 300 -> 3 full lane tiles
HID_DIM = 100            # lower-layer hidden width (module constant)
HID_PAD = 128            # 100 -> full lane tile
HID2_PAD = 256           # 2*HID 200 -> 256
NUM_STANCE_LABELS = 3
OUT_PAD = 128            # lane-dense logits block; wrapper slices [:, :3]
SMALL_VOCAB_MAX = 2048   # vocab sizes up to this use the VMEM-resident table


# --------------------------------------------------------------------------
# shared MLP tail (lower Linear + tanh, then the 4-layer final MLP)
# --------------------------------------------------------------------------
def _mlp_tail(rep2d, lw_ref, lb_ref, w1a_ref, w1b_ref, b1_ref,
              w2_ref, b2_ref, w3_ref, b3_ref, w4_ref, b4_ref, out_ref, TB):
    f32 = jnp.float32
    # shared lower Linear(300->128 padded) + tanh over both sides at once
    h = jnp.tanh(jnp.dot(rep2d, lw_ref[...], preferred_element_type=f32)
                 + lb_ref[...])                               # [2*TB, 128]
    to_h = h[:TB]
    from_h = h[TB:]
    # dropout(p=0.1) is the identity at inference time.
    # layer 1 as a split matmul == concat([to_h, from_h]) @ W1
    x = (jnp.dot(to_h, w1a_ref[...], preferred_element_type=f32)
         + jnp.dot(from_h, w1b_ref[...], preferred_element_type=f32)
         + b1_ref[...])
    x = jnp.maximum(x, 0.0)
    x = jnp.maximum(jnp.dot(x, w2_ref[...], preferred_element_type=f32)
                    + b2_ref[...], 0.0)
    x = jnp.maximum(jnp.dot(x, w3_ref[...], preferred_element_type=f32)
                    + b3_ref[...], 0.0)
    out_ref[...] = (jnp.dot(x, w4_ref[...], preferred_element_type=f32)
                    + b4_ref[...])                            # [TB, 128]


# --------------------------------------------------------------------------
# Path A: small vocab — embedding table resident in VMEM, gather + masked sum
# fused into a single counts @ E matmul (no per-row DMAs at all).
# --------------------------------------------------------------------------
def _nbow_kernel_vmem_table(ids_ref, mask_ref, e_ref,
                            lw_ref, lb_ref, w1a_ref, w1b_ref, b1_ref,
                            w2_ref, b2_ref, w3_ref, b3_ref, w4_ref, b4_ref,
                            out_ref, *, TB, S, VP):
    f32 = jnp.float32
    R = 2 * TB
    ids = ids_ref[...].reshape(R, S)                  # int32 [2*TB, S]
    msk = mask_ref[...].reshape(R, S)                 # f32   [2*TB, S]
    s_iota = lax.broadcasted_iota(jnp.int32, (1, S), 1)
    v_iota = lax.broadcasted_iota(jnp.int32, (1, VP), 1)

    def body(s, counts):
        sel = (s_iota == s)                                              # [1, S]
        id_col = jnp.sum(jnp.where(sel, ids, 0), axis=1, keepdims=True)  # [R, 1]
        m_col = jnp.sum(jnp.where(sel, msk, 0.0), axis=1, keepdims=True) # [R, 1]
        onehot = (id_col == v_iota).astype(f32)                          # [R, VP]
        return counts + m_col * onehot

    counts = lax.fori_loop(0, S, body, jnp.zeros((R, VP), f32))
    # rep[r, :] = sum_s mask[r, s] * E[ids[r, s], :]  ==  counts @ E
    rep2d = jnp.dot(counts, e_ref[...], preferred_element_type=f32)      # [R, DP]
    _mlp_tail(rep2d, lw_ref, lb_ref, w1a_ref, w1b_ref, b1_ref,
              w2_ref, b2_ref, w3_ref, b3_ref, w4_ref, b4_ref, out_ref, TB)


# --------------------------------------------------------------------------
# Path B: general vocab — E stays in HBM, per-row DMA gather into a rotating
# 2-slot buffer, masked bag-of-words accumulation overlapped with the DMAs.
# --------------------------------------------------------------------------
def _nbow_kernel_hbm_gather(ids_ref, mask_ref, e_hbm,
                            lw_ref, lb_ref, w1a_ref, w1b_ref, b1_ref,
                            w2_ref, b2_ref, w3_ref, b3_ref, w4_ref, b4_ref,
                            out_ref, buf, acc, sem, *, TB, S):
    f32 = jnp.float32
    R = 2 * TB

    def issue_slice(s, slot):
        # 2*TB single-row copies E[tok] -> buf[slot, side*TB + b]; no div/mod.
        for side in range(2):                         # static python loop
            col = side * S + s
            def issue_row(b, c, _side=side, _col=col, _slot=slot):
                tok = ids_ref[b, _col]
                pltpu.make_async_copy(e_hbm.at[tok],
                                      buf.at[_slot, _side * TB + b],
                                      sem.at[_slot]).start()
                return c
            lax.fori_loop(0, TB, issue_row, 0, unroll=8)

    def wait_slice(slot):
        # one wait whose descriptor covers all 2*TB rows' bytes of this slot
        pltpu.make_async_copy(e_hbm.at[pl.ds(0, R)], buf.at[slot],
                              sem.at[slot]).wait()

    # prime both slots
    issue_slice(0, 0)
    if S > 1:
        issue_slice(1, 1)

    acc[...] = jnp.zeros_like(acc)
    s_iota = lax.broadcasted_iota(jnp.int32, (1, S), 1)

    def body(s, c):
        slot = s % 2
        wait_slice(slot)
        # mask column s as per-row scalars (one-hot lane reduce: safe + cheap,
        # and hidden under the in-flight DMA of slice s+1)
        m2d = mask_ref[...].reshape(R, S)
        m_col = jnp.sum(jnp.where(s_iota == s, m2d, 0.0),
                        axis=1, keepdims=True)                    # [R, 1]
        acc[...] = acc[...] + buf[slot] * m_col

        @pl.when(s + 2 < S)
        def _():
            issue_slice(s + 2, slot)

        return c

    lax.fori_loop(0, S, body, 0)
    _mlp_tail(acc[...], lw_ref, lb_ref, w1a_ref, w1b_ref, b1_ref,
              w2_ref, b2_ref, w3_ref, b3_ref, w4_ref, b4_ref, out_ref, TB)


# --------------------------------------------------------------------------
# wrapper
# --------------------------------------------------------------------------
def _pick_tb(B, S):
    """Batch tile: multiple of 8 dividing B (or B itself).  Prefer (a) >= 2
    grid steps so ("parallel",) really splits work across v7x's two cores,
    (b) the largest tile <= 256 for MXU occupancy, subject to the per-tile
    SMEM ids block staying small."""
    id_cols_padded = ((2 * S + 127) // 128) * 128
    smem_budget = 256 * 1024
    cands = [c for c in (256, 128, 64, 32, 16, 8) if B % c == 0]
    if not cands:
        return B                                   # block == full batch dim
    pref = [c for c in cands if B // c >= 2] or cands
    fit = [c for c in pref if c * id_cols_padded * 4 <= smem_budget] or [pref[-1]]
    return fit[0]


def nbow_pairwise_stance_forward(to_ids, from_ids, to_ids_mask, from_ids_mask,
                                 kp, *, force_hbm_gather=False):
    """Returns stance_logits [B, 3] (the `stance_labels is None` path)."""
    B, S = to_ids.shape
    E = kp["E"]                       # [V, DIM_EMB_PAD] f32
    V, DP = E.shape
    TB = _pick_tb(B, S)
    n_steps = B // TB

    masks = jnp.stack([to_ids_mask, from_ids_mask], axis=0).astype(jnp.float32)

    weight_specs = [
        pl.BlockSpec((DP, HID_PAD), lambda i: (0, 0)),            # lw
        pl.BlockSpec((1, HID_PAD), lambda i: (0, 0)),             # lb
        pl.BlockSpec((HID_PAD, HID2_PAD), lambda i: (0, 0)),      # w1a
        pl.BlockSpec((HID_PAD, HID2_PAD), lambda i: (0, 0)),      # w1b
        pl.BlockSpec((1, HID2_PAD), lambda i: (0, 0)),            # b1
        pl.BlockSpec((HID2_PAD, HID2_PAD), lambda i: (0, 0)),     # w2
        pl.BlockSpec((1, HID2_PAD), lambda i: (0, 0)),            # b2
        pl.BlockSpec((HID2_PAD, HID2_PAD), lambda i: (0, 0)),     # w3
        pl.BlockSpec((1, HID2_PAD), lambda i: (0, 0)),            # b3
        pl.BlockSpec((HID2_PAD, OUT_PAD), lambda i: (0, 0)),      # w4
        pl.BlockSpec((1, OUT_PAD), lambda i: (0, 0)),             # b4
    ]
    weights = (kp["lw"], kp["lb"], kp["w1a"], kp["w1b"], kp["b1"],
               kp["w2"], kp["b2"], kp["w3"], kp["b3"], kp["w4"], kp["b4"])
    weight_bytes = sum(int(w.size) * 4 for w in weights)
    out_spec = pl.BlockSpec((TB, OUT_PAD), lambda i: (i, 0))
    out_shape = jax.ShapeDtypeStruct((B, OUT_PAD), jnp.float32)

    use_vmem_table = (V <= SMALL_VOCAB_MAX) and (not force_hbm_gather)

    if use_vmem_table:
        VP = ((V + 127) // 128) * 128
        e_pad = jnp.pad(E, ((0, VP - V), (0, 0)))
        ids = jnp.stack([to_ids, from_ids], axis=0).astype(jnp.int32)     # [2,B,S]
        kernel = functools.partial(_nbow_kernel_vmem_table, TB=TB, S=S, VP=VP)
        in_specs = [
            pl.BlockSpec((2, TB, S), lambda i: (0, i, 0)),                # ids
            pl.BlockSpec((2, TB, S), lambda i: (0, i, 0)),                # masks
            pl.BlockSpec((VP, DP), lambda i: (0, 0)),                     # E (VMEM)
        ] + weight_specs
        scratch_shapes = []
        inputs = (ids, masks, e_pad) + weights
        ws = (2 * VP * DP * 4 + 2 * TB * VP * 4
              + 4 * (2 * TB * S * 4) * 2 + 2 * weight_bytes
              + 2 * TB * OUT_PAD * 4)
        gather_flops = 2 * B * 2 * VP * DP
        gather_bytes = VP * DP * 4 + 2 * B * S * 8
    else:
        # the per-slice group wait reinterprets rows [0, 2*TB) of E as its
        # byte-count descriptor, so the vocab must be at least that big.
        assert 2 * TB <= V, "HBM gather path requires vocab >= 2 * batch tile"
        ids = jnp.concatenate([to_ids, from_ids], axis=1).astype(jnp.int32)  # [B,2S]
        kernel = functools.partial(_nbow_kernel_hbm_gather, TB=TB, S=S)
        in_specs = [
            pl.BlockSpec((TB, 2 * S), lambda i: (i, 0),
                         memory_space=pltpu.MemorySpace.SMEM),            # ids
            pl.BlockSpec((2, TB, S), lambda i: (0, i, 0)),                # masks
            pl.BlockSpec(memory_space=pl.ANY),                            # E (HBM)
        ] + weight_specs
        scratch_shapes = [
            pltpu.VMEM((2, 2 * TB, DP), jnp.float32),   # rotating gather buffer
            pltpu.VMEM((2 * TB, DP), jnp.float32),      # bag-of-words accumulator
            pltpu.SemaphoreType.DMA((2,)),              # one semaphore per slot
        ]
        inputs = (ids, masks, E) + weights
        ws = (2 * 2 * TB * DP * 4 + 2 * TB * DP * 4
              + 2 * (2 * TB * S * 4) + 2 * weight_bytes
              + 2 * TB * OUT_PAD * 4)
        gather_flops = 2 * B * S * 2 * DP
        gather_bytes = 2 * B * S * DP * 4 + 2 * B * S * 8

    # sized from the working set; capped well inside v7x's 64 MiB physical VMEM
    vmem_limit = int(min(48 * 1024 * 1024,
                         max(32 * 1024 * 1024, 2 * ws + 8 * 1024 * 1024)))

    flops = int(gather_flops
                + B * (2 * 2 * DP * HID_PAD
                       + 2 * 2 * HID_PAD * HID2_PAD
                       + 2 * 2 * HID2_PAD * HID2_PAD
                       + 2 * HID2_PAD * OUT_PAD))
    bytes_accessed = int(gather_bytes + weight_bytes + B * OUT_PAD * 4)
    transcendentals = int(2 * B * HID_PAD)

    grid_spec = pltpu.PrefetchScalarGridSpec(
        num_scalar_prefetch=0,
        grid=(n_steps,),
        in_specs=in_specs,
        out_specs=out_spec,
        scratch_shapes=scratch_shapes,
    )

    out = pl.pallas_call(
        kernel,
        out_shape=out_shape,
        grid_spec=grid_spec,
        compiler_params=pltpu.CompilerParams(
            dimension_semantics=("parallel",),        # megacore split on v7x
            vmem_limit_bytes=vmem_limit),
        cost_estimate=pl.CostEstimate(
            flops=flops, transcendentals=transcendentals,
            bytes_accessed=bytes_accessed),
    )(*inputs)

    return out[:, :NUM_STANCE_LABELS]


# --------------------------------------------------------------------------
# parameters
# --------------------------------------------------------------------------
def init_params(key, vocab_size):
    """PyTorch-faithful (unpadded) parameters."""
    ks = jax.random.split(key, 11)

    def linear(kw, kb, fan_in, fan_out):
        bound = float(fan_in) ** -0.5          # nn.Linear default init bound
        w = jax.random.uniform(kw, (fan_in, fan_out), jnp.float32, -bound, bound)
        b = jax.random.uniform(kb, (1, fan_out), jnp.float32, -bound, bound)
        return w, b

    E = jax.random.normal(ks[0], (vocab_size, DIM_EMB), jnp.float32)
    E = E.at[0].set(0.0)                        # padding_idx=0

    lower_w, lower_b = linear(ks[1], ks[2], DIM_EMB, HID_DIM)
    w1, b1 = linear(ks[3], ks[4], 2 * HID_DIM, 2 * HID_DIM)
    w2, b2 = linear(ks[5], ks[6], 2 * HID_DIM, 2 * HID_DIM)
    w3, b3 = linear(ks[7], ks[8], 2 * HID_DIM, 2 * HID_DIM)
    w4, b4 = linear(ks[9], ks[10], 2 * HID_DIM, NUM_STANCE_LABELS)

    return dict(E=E, lower_w=lower_w, lower_b=lower_b,
                w1=w1, b1=b1, w2=w2, b2=b2, w3=w3, b3=b3, w4=w4, b4=b4)


def prepare_kernel_params(p):
    """Zero-pad to lane-dense shapes (300->384, 100->128, 200->256, 3->128).
    Padded rows/cols are exactly zero, so results match the unpadded math."""
    H, H2 = HID_DIM, 2 * HID_DIM

    def pad2(w, rows, cols):
        out = jnp.zeros((rows, cols), jnp.float32)
        return out.at[:w.shape[0], :w.shape[1]].set(w)

    w1a = jnp.zeros((HID_PAD, HID2_PAD), jnp.float32).at[:H, :H2].set(p["w1"][:H])
    w1b = jnp.zeros((HID_PAD, HID2_PAD), jnp.float32).at[:H, :H2].set(p["w1"][H:])

    return dict(
        E=pad2(p["E"], p["E"].shape[0], DIM_EMB_PAD),
        lw=pad2(p["lower_w"], DIM_EMB_PAD, HID_PAD),
        lb=pad2(p["lower_b"], 1, HID_PAD),
        w1a=w1a, w1b=w1b, b1=pad2(p["b1"], 1, HID2_PAD),
        w2=pad2(p["w2"], HID2_PAD, HID2_PAD), b2=pad2(p["b2"], 1, HID2_PAD),
        w3=pad2(p["w3"], HID2_PAD, HID2_PAD), b3=pad2(p["b3"], 1, HID2_PAD),
        w4=pad2(p["w4"], HID2_PAD, OUT_PAD), b4=pad2(p["b4"], 1, OUT_PAD),
    )


def _reference_forward(to_ids, from_ids, to_mask, from_mask, p):
    """Plain-JAX reference mirroring the PyTorch forward (eval mode)."""
    to_emb = jnp.take(p["E"], to_ids, axis=0)
    from_emb = jnp.take(p["E"], from_ids, axis=0)
    to_rep = jnp.sum(to_emb * to_mask[:, :, None], axis=1)
    from_rep = jnp.sum(from_emb * from_mask[:, :, None], axis=1)
    to_h = jnp.tanh(to_rep @ p["lower_w"] + p["lower_b"])
    from_h = jnp.tanh(from_rep @ p["lower_w"] + p["lower_b"])
    x = jnp.concatenate([to_h, from_h], axis=1)
    x = jnp.maximum(x @ p["w1"] + p["b1"], 0.0)
    x = jnp.maximum(x @ p["w2"] + p["b2"], 0.0)
    x = jnp.maximum(x @ p["w3"] + p["b3"], 0.0)
    return x @ p["w4"] + p["b4"]


if __name__ == "__main__":
    B, S, VOCAB = 16, 8, 64     # TB=8 -> grid of 2 (exercises pipelining + parallel split)

    key = jax.random.PRNGKey(0)
    k_param, k_to, k_from, k_tm, k_fm = jax.random.split(key, 5)

    params = init_params(k_param, VOCAB)
    kparams = prepare_kernel_params(params)

    to_ids = jax.random.randint(k_to, (B, S), 1, VOCAB, dtype=jnp.int32)
    from_ids = jax.random.randint(k_from, (B, S), 1, VOCAB, dtype=jnp.int32)
    to_ids_mask = (jax.random.uniform(k_tm, (B, S)) > 0.25).astype(jnp.float32)
    from_ids_mask = (jax.random.uniform(k_fm, (B, S)) > 0.25).astype(jnp.float32)

    ref = _reference_forward(to_ids, from_ids, to_ids_mask, from_ids_mask, params)

    # Path A: small vocab -> VMEM-resident table, gather fused into counts @ E.
    fwd_vmem = jax.jit(nbow_pairwise_stance_forward)
    logits_vmem = jax.block_until_ready(
        fwd_vmem(to_ids, from_ids, to_ids_mask, from_ids_mask, kparams))

    # Path B: general vocab -> HBM row-DMA gather with rotating double buffer.
    fwd_hbm = jax.jit(functools.partial(nbow_pairwise_stance_forward,
                                        force_hbm_gather=True))
    logits_hbm = jax.block_until_ready(
        fwd_hbm(to_ids, from_ids, to_ids_mask, from_ids_mask, kparams))

    assert logits_vmem.shape == (B, NUM_STANCE_LABELS)
    assert logits_hbm.shape == (B, NUM_STANCE_LABELS)
    assert jnp.allclose(logits_vmem, ref, atol=1e-3, rtol=1e-3)
    assert jnp.allclose(logits_hbm, ref, atol=1e-3, rtol=1e-3)

    print("KERNEL_OK")
</pallas_src>

<mosaic_0001>
module attributes {stable_mosaic.version = 11 : i64} {
  func.func @_nbow_kernel_vmem_table(%arg0: i32, %arg1: memref<2x8x8xi32, #tpu.memory_space<vmem>>, %arg2: memref<2x8x8xf32, #tpu.memory_space<vmem>>, %arg3: memref<128x384xf32, #tpu.memory_space<vmem>>, %arg4: memref<384x128xf32, #tpu.memory_space<vmem>>, %arg5: memref<1x128xf32, #tpu.memory_space<vmem>>, %arg6: memref<128x256xf32, #tpu.memory_space<vmem>>, %arg7: memref<128x256xf32, #tpu.memory_space<vmem>>, %arg8: memref<1x256xf32, #tpu.memory_space<vmem>>, %arg9: memref<256x256xf32, #tpu.memory_space<vmem>>, %arg10: memref<1x256xf32, #tpu.memory_space<vmem>>, %arg11: memref<256x256xf32, #tpu.memory_space<vmem>>, %arg12: memref<1x256xf32, #tpu.memory_space<vmem>>, %arg13: memref<256x128xf32, #tpu.memory_space<vmem>>, %arg14: memref<1x128xf32, #tpu.memory_space<vmem>>, %arg15: memref<8x128xf32, #tpu.memory_space<vmem>>) attributes {dimension_semantics = [#tpu.dimension_semantics<parallel>], iteration_bounds = array<i64: 2>, scalar_prefetch = 0 : i64, scratch_operands = 0 : i64, tpu.core_type = #tpu.core_type<tc>, window_params = [{transform_indices = @transform_0, window_bounds = array<i64: 2, 8, 8>}, {transform_indices = @transform_1, window_bounds = array<i64: 2, 8, 8>}, {pipeline_mode = #tpu.pipeline_mode<synchronous>, transform_indices = @transform_2, window_bounds = array<i64: 128, 384>}, {pipeline_mode = #tpu.pipeline_mode<synchronous>, transform_indices = @transform_3, window_bounds = array<i64: 384, 128>}, {pipeline_mode = #tpu.pipeline_mode<synchronous>, transform_indices = @transform_4, window_bounds = array<i64: 1, 128>}, {pipeline_mode = #tpu.pipeline_mode<synchronous>, transform_indices = @transform_5, window_bounds = array<i64: 128, 256>}, {pipeline_mode = #tpu.pipeline_mode<synchronous>, transform_indices = @transform_6, window_bounds = array<i64: 128, 256>}, {pipeline_mode = #tpu.pipeline_mode<synchronous>, transform_indices = @transform_7, window_bounds = array<i64: 1, 256>}, {pipeline_mode = #tpu.pipeline_mode<synchronous>, transform_indices = @transform_8, window_bounds = array<i64: 256, 256>}, {pipeline_mode = #tpu.pipeline_mode<synchronous>, transform_indices = @transform_9, window_bounds = array<i64: 1, 256>}, {pipeline_mode = #tpu.pipeline_mode<synchronous>, transform_indices = @transform_10, window_bounds = array<i64: 256, 256>}, {pipeline_mode = #tpu.pipeline_mode<synchronous>, transform_indices = @transform_11, window_bounds = array<i64: 1, 256>}, {pipeline_mode = #tpu.pipeline_mode<synchronous>, transform_indices = @transform_12, window_bounds = array<i64: 256, 128>}, {pipeline_mode = #tpu.pipeline_mode<synchronous>, transform_indices = @transform_13, window_bounds = array<i64: 1, 128>}, {transform_indices = @transform_14, window_bounds = array<i64: 8, 128>}]} {
    %c0 = arith.constant 0 : index
    %c0_0 = arith.constant 0 : index
    %c0_1 = arith.constant 0 : index
    %0 = vector.load %arg1[%c0, %c0_0, %c0_1] : memref<2x8x8xi32, #tpu.memory_space<vmem>>, vector<2x8x8xi32>
    %1 = vector.shape_cast %0 : vector<2x8x8xi32> to vector<16x8xi32>
    %c0_2 = arith.constant 0 : index
    %c0_3 = arith.constant 0 : index
    %c0_4 = arith.constant 0 : index
    %2 = vector.load %arg2[%c0_2, %c0_3, %c0_4] : memref<2x8x8xf32, #tpu.memory_space<vmem>>, vector<2x8x8xf32>
    %3 = vector.shape_cast %2 : vector<2x8x8xf32> to vector<16x8xf32>
    %4 = tpu.iota {dimensions = array<i32: 1>} : vector<1x8xi32>
    %5 = tpu.iota {dimensions = array<i32: 1>} : vector<1x128xi32>
    %cst = arith.constant 0.000000e+00 : f32
    %6 = vector.broadcast %cst : f32 to vector<16x128xf32>
    %c0_i32 = arith.constant 0 : i32
    %c8_i32 = arith.constant 8 : i32
    %7 = arith.addi %c0_i32, %c8_i32 : i32
    %c1_i32 = arith.constant 1 : i32
    %8 = scf.for %arg16 = %c0_i32 to %7 step %c1_i32 iter_args(%arg17 = %6) -> (vector<16x128xf32>)  : i32 {
      %49 = vector.broadcast %arg16 : i32 to vector<1x8xi32>
      %50 = arith.cmpi eq, %4, %49 : vector<1x8xi32>
      %c0_i32_42 = arith.constant 0 : i32
      %51 = vector.shape_cast %50 : vector<1x8xi1> to vector<1x8xi1>
      %52 = vector.broadcast %51 : vector<1x8xi1> to vector<16x8xi1>
      %53 = vector.broadcast %c0_i32_42 : i32 to vector<16x8xi32>
      %54 = arith.select %52, %1, %53 : vector<16x8xi1>, vector<16x8xi32>
      %cst_43 = arith.constant dense<0> : vector<16xi32>
      %55 = vector.multi_reduction <add>, %54, %cst_43 [1] : vector<16x8xi32> to vector<16xi32>
      %56 = vector.shape_cast %55 : vector<16xi32> to vector<16x1xi32>
      %cst_44 = arith.constant 0.000000e+00 : f32
      %57 = vector.shape_cast %50 : vector<1x8xi1> to vector<1x8xi1>
      %58 = vector.broadcast %57 : vector<1x8xi1> to vector<16x8xi1>
      %59 = vector.broadcast %cst_44 : f32 to vector<16x8xf32>
      %60 = arith.select %58, %3, %59 : vector<16x8xi1>, vector<16x8xf32>
      %cst_45 = arith.constant dense<0.000000e+00> : vector<16xf32>
      %61 = vector.multi_reduction <add>, %60, %cst_45 [1] : vector<16x8xf32> to vector<16xf32>
      %62 = vector.shape_cast %61 : vector<16xf32> to vector<16x1xf32>
      %63 = vector.broadcast %56 : vector<16x1xi32> to vector<16x128xi32>
      %64 = vector.broadcast %5 : vector<1x128xi32> to vector<16x128xi32>
      %65 = arith.cmpi eq, %63, %64 : vector<16x128xi32>
      %66 = arith.extui %65 : vector<16x128xi1> to vector<16x128xi32>
      %67 = arith.sitofp %66 : vector<16x128xi32> to vector<16x128xf32>
      %68 = vector.broadcast %62 : vector<16x1xf32> to vector<16x128xf32>
      %69 = arith.mulf %68, %67 : vector<16x128xf32>
      %70 = arith.addf %arg17, %69 : vector<16x128xf32>
      scf.yield %70 : vector<16x128xf32>
    }
    %c8_i32_5 = arith.constant 8 : i32
    %c0_6 = arith.constant 0 : index
    %c0_7 = arith.constant 0 : index
    %9 = vector.load %arg3[%c0_6, %c0_7] : memref<128x384xf32, #tpu.memory_space<vmem>>, vector<128x384xf32>
    %cst_8 = arith.constant dense<0.000000e+00> : vector<16x384xf32>
    %10 = tpu.matmul %8, %9, %cst_8 {dimension_numbers = #tpu.dot_dimension_numbers<[1], [0], [0], [1], [0, 0, 1, 1], [], []>} : vector<16x128xf32>, vector<128x384xf32>, vector<16x384xf32> -> vector<16x384xf32>
    %c0_9 = arith.constant 0 : index
    %c0_10 = arith.constant 0 : index
    %11 = vector.load %arg4[%c0_9, %c0_10] : memref<384x128xf32, #tpu.memory_space<vmem>>, vector<384x128xf32>
    %cst_11 = arith.constant dense<0.000000e+00> : vector<16x128xf32>
    %12 = tpu.matmul %10, %11, %cst_11 {dimension_numbers = #tpu.dot_dimension_numbers<[1], [0], [0], [1], [0, 0, 1, 1], [], []>} : vector<16x384xf32>, vector<384x128xf32>, vector<16x128xf32> -> vector<16x128xf32>
    %c0_12 = arith.constant 0 : index
    %c0_13 = arith.constant 0 : index
    %13 = vector.load %arg5[%c0_12, %c0_13] : memref<1x128xf32, #tpu.memory_space<vmem>>, vector<1x128xf32>
    %14 = vector.broadcast %13 : vector<1x128xf32> to vector<16x128xf32>
    %15 = arith.addf %12, %14 : vector<16x128xf32>
    %16 = math.tanh %15 : vector<16x128xf32>
    %17 = vector.extract_strided_slice %16 {offsets = [0, 0], sizes = [8, 128], strides = [1, 1]} : vector<16x128xf32> to vector<8x128xf32>
    %18 = vector.extract_strided_slice %16 {offsets = [8, 0], sizes = [8, 128], strides = [1, 1]} : vector<16x128xf32> to vector<8x128xf32>
    %c0_14 = arith.constant 0 : index
    %c0_15 = arith.constant 0 : index
    %19 = vector.load %arg6[%c0_14, %c0_15] : memref<128x256xf32, #tpu.memory_space<vmem>>, vector<128x256xf32>
    %cst_16 = arith.constant dense<0.000000e+00> : vector<8x256xf32>
    %20 = tpu.matmul %17, %19, %cst_16 {dimension_numbers = #tpu.dot_dimension_numbers<[1], [0], [0], [1], [0, 0, 1, 1], [], []>} : vector<8x128xf32>, vector<128x256xf32>, vector<8x256xf32> -> vector<8x256xf32>
    %c0_17 = arith.constant 0 : index
    %c0_18 = arith.constant 0 : index
    %21 = vector.load %arg7[%c0_17, %c0_18] : memref<128x256xf32, #tpu.memory_space<vmem>>, vector<128x256xf32>
    %cst_19 = arith.constant dense<0.000000e+00> : vector<8x256xf32>
    %22 = tpu.matmul %18, %21, %cst_19 {dimension_numbers = #tpu.dot_dimension_numbers<[1], [0], [0], [1], [0, 0, 1, 1], [], []>} : vector<8x128xf32>, vector<128x256xf32>, vector<8x256xf32> -> vector<8x256xf32>
    %23 = arith.addf %20, %22 : vector<8x256xf32>
    %c0_20 = arith.constant 0 : index
    %c0_21 = arith.constant 0 : index
    %24 = vector.load %arg8[%c0_20, %c0_21] : memref<1x256xf32, #tpu.memory_space<vmem>>, vector<1x256xf32>
    %25 = vector.broadcast %24 : vector<1x256xf32> to vector<8x256xf32>
    %26 = arith.addf %23, %25 : vector<8x256xf32>
    %cst_22 = arith.constant 0.000000e+00 : f32
    %27 = vector.broadcast %cst_22 : f32 to vector<8x256xf32>
    %28 = arith.maximumf %26, %27 : vector<8x256xf32>
    %c0_23 = arith.constant 0 : index
    %c0_24 = arith.constant 0 : index
    %29 = vector.load %arg9[%c0_23, %c0_24] : memref<256x256xf32, #tpu.memory_space<vmem>>, vector<256x256xf32>
    %cst_25 = arith.constant dense<0.000000e+00> : vector<8x256xf32>
    %30 = tpu.matmul %28, %29, %cst_25 {dimension_numbers = #tpu.dot_dimension_numbers<[1], [0], [0], [1], [0, 0, 1, 1], [], []>} : vector<8x256xf32>, vector<256x256xf32>, vector<8x256xf32> -> vector<8x256xf32>
    %c0_26 = arith.constant 0 : index
    %c0_27 = arith.constant 0 : index
    %31 = vector.load %arg10[%c0_26, %c0_27] : memref<1x256xf32, #tpu.memory_space<vmem>>, vector<1x256xf32>
    %32 = vector.broadcast %31 : vector<1x256xf32> to vector<8x256xf32>
    %33 = arith.addf %30, %32 : vector<8x256xf32>
    %cst_28 = arith.constant 0.000000e+00 : f32
    %34 = vector.broadcast %cst_28 : f32 to vector<8x256xf32>
    %35 = arith.maximumf %33, %34 : vector<8x256xf32>
    %c0_29 = arith.constant 0 : index
    %c0_30 = arith.constant 0 : index
    %36 = vector.load %arg11[%c0_29, %c0_30] : memref<256x256xf32, #tpu.memory_space<vmem>>, vector<256x256xf32>
    %cst_31 = arith.constant dense<0.000000e+00> : vector<8x256xf32>
    %37 = tpu.matmul %35, %36, %cst_31 {dimension_numbers = #tpu.dot_dimension_numbers<[1], [0], [0], [1], [0, 0, 1, 1], [], []>} : vector<8x256xf32>, vector<256x256xf32>, vector<8x256xf32> -> vector<8x256xf32>
    %c0_32 = arith.constant 0 : index
    %c0_33 = arith.constant 0 : index
    %38 = vector.load %arg12[%c0_32, %c0_33] : memref<1x256xf32, #tpu.memory_space<vmem>>, vector<1x256xf32>
    %39 = vector.broadcast %38 : vector<1x256xf32> to vector<8x256xf32>
    %40 = arith.addf %37, %39 : vector<8x256xf32>
    %cst_34 = arith.constant 0.000000e+00 : f32
    %41 = vector.broadcast %cst_34 : f32 to vector<8x256xf32>
    %42 = arith.maximumf %40, %41 : vector<8x256xf32>
    %c0_35 = arith.constant 0 : index
    %c0_36 = arith.constant 0 : index
    %43 = vector.load %arg13[%c0_35, %c0_36] : memref<256x128xf32, #tpu.memory_space<vmem>>, vector<256x128xf32>
    %cst_37 = arith.constant dense<0.000000e+00> : vector<8x128xf32>
    %44 = tpu.matmul %42, %43, %cst_37 {dimension_numbers = #tpu.dot_dimension_numbers<[1], [0], [0], [1], [0, 0, 1, 1], [], []>} : vector<8x256xf32>, vector<256x128xf32>, vector<8x128xf32> -> vector<8x128xf32>
    %c0_38 = arith.constant 0 : index
    %c0_39 = arith.constant 0 : index
    %45 = vector.load %arg14[%c0_38, %c0_39] : memref<1x128xf32, #tpu.memory_space<vmem>>, vector<1x128xf32>
    %46 = vector.broadcast %45 : vector<1x128xf32> to vector<8x128xf32>
    %47 = arith.addf %44, %46 : vector<8x128xf32>
    %c0_40 = arith.constant 0 : index
    %c0_41 = arith.constant 0 : index
    %48 = vector.load %arg15[%c0_40, %c0_41] : memref<8x128xf32, #tpu.memory_space<vmem>>, vector<8x128xf32>
    tpu.vector_store %arg15[%c0_40, %c0_41], %47 {strides = array<i32>} : memref<8x128xf32, #tpu.memory_space<vmem>>, vector<8x128xf32>,
    return
  }
  func.func @transform_0(%arg0: i32) -> (i32, i32, i32) {
    %c0_i32 = arith.constant 0 : i32
    %c0_i32_0 = arith.constant 0 : i32
    %c0_i32_1 = arith.constant 0 : i32
    return %c0_i32, %arg0, %c0_i32_0 : i32, i32, i32
  }
  func.func @transform_1(%arg0: i32) -> (i32, i32, i32) {
    %c0_i32 = arith.constant 0 : i32
    %c0_i32_0 = arith.constant 0 : i32
    %c0_i32_1 = arith.constant 0 : i32
    return %c0_i32, %arg0, %c0_i32_0 : i32, i32, i32
  }
  func.func @transform_2(%arg0: i32) -> (i32, i32) {
    %c0_i32 = arith.constant 0 : i32
    %c0_i32_0 = arith.constant 0 : i32
    %c0_i32_1 = arith.constant 0 : i32
    return %c0_i32, %c0_i32_0 : i32, i32
  }
  func.func @transform_3(%arg0: i32) -> (i32, i32) {
    %c0_i32 = arith.constant 0 : i32
    %c0_i32_0 = arith.constant 0 : i32
    %c0_i32_1 = arith.constant 0 : i32
    return %c0_i32, %c0_i32_0 : i32, i32
  }
  func.func @transform_4(%arg0: i32) -> (i32, i32) {
    %c0_i32 = arith.constant 0 : i32
    %c0_i32_0 = arith.constant 0 : i32
    %c0_i32_1 = arith.constant 0 : i32
    return %c0_i32, %c0_i32_0 : i32, i32
  }
  func.func @transform_5(%arg0: i32) -> (i32, i32) {
    %c0_i32 = arith.constant 0 : i32
    %c0_i32_0 = arith.constant 0 : i32
    %c0_i32_1 = arith.constant 0 : i32
    return %c0_i32, %c0_i32_0 : i32, i32
  }
  func.func @transform_6(%arg0: i32) -> (i32, i32) {
    %c0_i32 = arith.constant 0 : i32
    %c0_i32_0 = arith.constant 0 : i32
    %c0_i32_1 = arith.constant 0 : i32
    return %c0_i32, %c0_i32_0 : i32, i32
  }
  func.func @transform_7(%arg0: i32) -> (i32, i32) {
    %c0_i32 = arith.constant 0 : i32
    %c0_i32_0 = arith.constant 0 : i32
    %c0_i32_1 = arith.constant 0 : i32
    return %c0_i32, %c0_i32_0 : i32, i32
  }
  func.func @transform_8(%arg0: i32) -> (i32, i32) {
    %c0_i32 = arith.constant 0 : i32
    %c0_i32_0 = arith.constant 0 : i32
    %c0_i32_1 = arith.constant 0 : i32
    return %c0_i32, %c0_i32_0 : i32, i32
  }
  func.func @transform_9(%arg0: i32) -> (i32, i32) {
    %c0_i32 = arith.constant 0 : i32
    %c0_i32_0 = arith.constant 0 : i32
    %c0_i32_1 = arith.constant 0 : i32
    return %c0_i32, %c0_i32_0 : i32, i32
  }
  func.func @transform_10(%arg0: i32) -> (i32, i32) {
    %c0_i32 = arith.constant 0 : i32
    %c0_i32_0 = arith.constant 0 : i32
    %c0_i32_1 = arith.constant 0 : i32
    return %c0_i32, %c0_i32_0 : i32, i32
  }
  func.func @transform_11(%arg0: i32) -> (i32, i32) {
    %c0_i32 = arith.constant 0 : i32
    %c0_i32_0 = arith.constant 0 : i32
    %c0_i32_1 = arith.constant 0 : i32
    return %c0_i32, %c0_i32_0 : i32, i32
  }
  func.func @transform_12(%arg0: i32) -> (i32, i32) {
    %c0_i32 = arith.constant 0 : i32
    %c0_i32_0 = arith.constant 0 : i32
    %c0_i32_1 = arith.constant 0 : i32
    return %c0_i32, %c0_i32_0 : i32, i32
  }
  func.func @transform_13(%arg0: i32) -> (i32, i32) {
    %c0_i32 = arith.constant 0 : i32
    %c0_i32_0 = arith.constant 0 : i32
    %c0_i32_1 = arith.constant 0 : i32
    return %c0_i32, %c0_i32_0 : i32, i32
  }
  func.func @transform_14(%arg0: i32) -> (i32, i32) {
    %c0_i32 = arith.constant 0 : i32
    %c0_i32_0 = arith.constant 0 : i32
    return %arg0, %c0_i32 : i32, i32
  }
}

</mosaic_0001>

<bundles_post_ra>
// kernel: nbow_pairwise_stance_forward.1
= control target key start
LH: loop header
LB: loop body
LE: loop exit
PB: predicated region body
PF: predicated region fallthrough
CT: control target
= control target key end

     0   :  { %s3062_s0 = inlined_call_operand.vmem [shape: s32[2,16,8], index: 0, kind: input, shape index: {}]   ;;  %s3063_s1 = inlined_call_operand.vmem [shape: f32[2,16,8], index: 1, kind: input, shape index: {}]   ;;  %s3064_s2 = inlined_call_operand.vmem [shape: f32[128,384], index: 2, kind: input, shape index: {}]   ;;  %s3065_s3 = inlined_call_operand.hbm [shape: f32[384,128], index: 3, kind: input, shape index: {}]   ;;  %s3066_s4 = inlined_call_operand.vmem [shape: f32[1,128], index: 4, kind: input, shape index: {}]   ;;  %s3067_s5 = inlined_call_operand.vmem [shape: f32[128,256], index: 5, kind: input, shape index: {}]   ;;  %s3068_s6 = inlined_call_operand.hbm [shape: f32[128,256], index: 6, kind: input, shape index: {}]   ;;  %s3069_s7 = inlined_call_operand.vmem [shape: f32[1,256], index: 7, kind: input, shape index: {}]   ;;  %s3070_s8 = inlined_call_operand.vmem [shape: f32[256,256], index: 8, kind: input, shape index: {}]   ;;  %s3071_s9 = inlined_call_operand.vmem [shape: f32[1,256], index: 9, kind: input, shape index: {}]   ;;  %s3072_s10 = inlined_call_operand.hbm [shape: f32[256,256], index: 10, kind: input, shape index: {}]   ;;  %s3073_s11 = inlined_call_operand.vmem [shape: f32[1,256], index: 11, kind: input, shape index: {}]   ;;  %s3074_s12 = inlined_call_operand.hbm [shape: f32[256,128], index: 12, kind: input, shape index: {}]   ;;  %s3075_s13 = inlined_call_operand.vmem [shape: f32[1,128], index: 13, kind: input, shape index: {}]   ;;  %s3076_s14 = inlined_call_operand.vmem [shape: f32[16,128], index: 14, kind: output, shape index: {}]  }
   0x1   :  { %3081 = sst [smem:[#allocation16_spill]] %s3065_s3 }
   0x2   :  { %3082 = sst [smem:[#allocation17_spill]] %s3068_s6 }
   0x3   :  { %19 = vsyncpa [#allocation5], 0 }
   0x4   :  { %20 = vsyncpa [#allocation7], 0 }
   0x5   :  { %21 = vsyncpa [#allocation10], 0  ;;  %s2407_s29 = smov 0   ;;  %s2409_s30 = smov 0  }
   0x6   :  { %s2411_s15 = smov 0  }
   0x7 LB: > { %s2423_s16 = sadd.s32 4294967295, %s2308_s15   ;;  %s2426_s17 = sadd.s32 1, %s2308_s15   ;;  %s2308_s15 = sphi %s2411_s15, %s3096_s15   ;;  %s2304_s30 = sphi %s2409_s30, %s3099_s30   ;;  %s2300_s29 = sphi %s2407_s29, %s3098_s29  }
   0x8   : > { %3083 = sst [smem:[#allocation14_spill]] %s2426_s17  ;;  %s31_s18 = ssub.s32 %s2308_s15, %s2426_s17 }
   0x9   : > { %s34_s19 = sadd.s32 1, %s2304_s30  ;;  %p32_p0 = scmp.eq.s32.totalorder %s31_s18, 0 }
   0xa   : > { %p41_p1 = scmp.ne.s32.totalorder %s2304_s30, %s2300_s29  ;;  %p42_p2 = scmp.eq.s32.totalorder %s2308_s15, 0 }
   0xb   : > { %p1856_p3 = scmp.ge.s32.totalorder %s2308_s15, 1  ;;  %p362_p5 = scmp.lt.s32.totalorder %s2308_s15, 3 }
   0xc   : > { %s2436_s20 = scalar_select %p32_p0, %s2304_s30, %s34_s19  }
   0xd   : > { %p2438_p4 = por %p42_p2, %p41_p1  ;;  %p2088_p6 = scmp.eq.s32.totalorder %s2423_s16, 0 }
   0xe   : > { %3084 = sst [smem:[#allocation15_spill]] %s2436_s20  ;;  %p2444_p7 = pnand %p1856_p3, %p362_p5 }
   0xf   : > { %s2322_s23 = smov [#allocation6]   ;;  %s2323_s26 = smov [#allocation4]  }
  0x10   : > { %s396_s24 = sshll.u32 %s2322_s23, 4  ;;  %p2075_p8 = pneg %p2444_p7  ;;  %s397_s24 = int_to_ptr.vmem [resolvable:$true] %s396_s24 }
  0x11   : > { %s377_s27 = sshll.u32 %s2323_s26, 4  ;;  %s2169_s28 = scalar_lea.vmem %s397_s24, 4096  ;;  %s378_s27 = int_to_ptr.vmem [resolvable:$true] %s377_s27 }
  0x12   : > { %p2452_p9 = pnand %p2088_p6, %p2075_p8  ;;  %p2170_p11 = scmp.ne.s32.totalorder %s397_s24, %s2169_s28 }
  0x13   : > { %p2177_p0 = scmp.lt.s32.totalorder %s397_s24, %s397_s24  ;;  %p2178_p1 = scmp.lt.s32.totalorder %s2169_s28, %s2169_s28 }
  0x14   : > { %p2160_p10 = pneg %p2452_p9 }
  0x15   : > { %p2179_p2 = por %p2178_p1, %p2177_p0 }
  0x16   : > { %p2172_p12 = pnand %p2170_p11, %p2160_p10 }
  0x18   : > { %p2173_p13 = pneg %p2172_p12 }
  0x1a   : > { %p2180_p3 = pnand %p2179_p2, %p2173_p13 }
  0x1c   : > { %2183 = shalt.err (!%p2180_p3)
}
  0x1d   : > { %s3079_s18 = smov 256   ;;  %s3080_s19 = smov 16  }
  0x1e   : > { %s3088_s6 = sld [smem:[#allocation17_spill]]  ;;  %s2195_s20 = scalar_lea.vmem %s378_s27, 6144 }
  0x1f   : > { %p2196_p5 = scmp.ne.s32.totalorder %s378_s27, %s2195_s20  ;;  %p2203_p12 = scmp.lt.s32.totalorder %s378_s27, %s378_s27 }
  0x20   : > { %p2204_p13 = scmp.lt.s32.totalorder %s2195_s20, %s2195_s20 }
  0x21   : > { %p2198_p8 = pnand %p2196_p5, %p2160_p10 }
  0x22   : > { %p2205_p0 = por %p2204_p13, %p2203_p12 }
  0x23   : > { %p2199_p11 = pneg %p2198_p8 }
  0x24   : > { %2081 = dma.hbm_to_vmem [thread:$0]  (!%p2452_p9), %s3088_s6, 4096, %s397_s24, [#allocation7], %s3079_s18, %s3079_s18, %s3080_s19  }
  0x25   : > { %p2206_p1 = pnand %p2205_p0, %p2199_p11 }
  0x27   : > { %2209 = shalt.err (!%p2206_p1)
}
  0x28   : > { %s2326_s28 = smov 128   ;;  %s2327_s17 = smov 8  }
  0x29   : > { %s3089_s3 = sld [smem:[#allocation16_spill]]  ;;  %s2328_s26 = smov [#allocation8]  }
  0x2a   : > { %s418_s18 = sshll.u32 %s2328_s26, 4  ;;  %s2329_s19 = smov [#allocation9]   ;;  %s419_s18 = int_to_ptr.vmem [resolvable:$true] %s418_s18 }
  0x2b   : > { %s434_s6 = sshll.u32 %s2329_s19, 4  ;;  %s2221_s20 = scalar_lea.vmem %s419_s18, 8192  ;;  %s435_s6 = int_to_ptr.vmem [resolvable:$true] %s434_s6 }
  0x2c   : > { %p2222_p2 = scmp.ne.s32.totalorder %s419_s18, %s2221_s20  ;;  %p2229_p8 = scmp.lt.s32.totalorder %s419_s18, %s419_s18 }
  0x2d   : > { %p2230_p11 = scmp.lt.s32.totalorder %s2221_s20, %s2221_s20 }
  0x2e   : > { %p2224_p3 = pnand %p2222_p2, %p2160_p10 }
  0x2f   : > { %2078 = dma.hbm_to_vmem [thread:$0]  (!%p2452_p9), %s3089_s3, 6144, %s378_s27, [#allocation5], %s2326_s28, %s2326_s28, %s2327_s17  }
  0x30   : > { %p2225_p5 = pneg %p2224_p3  ;;  %p2231_p12 = por %p2230_p11, %p2229_p8 }
  0x32   : > { %p2232_p13 = pnand %p2231_p12, %p2225_p5 }
  0x34   : > { %2235 = shalt.err (!%p2232_p13)
}
  0x35   : > { %s3090_s27 = smov 16   ;;  %s3091_s24 = smov 256  }
  0x36   : > { %2084 = dma.hbm_to_vmem [thread:$0]  (!%p2452_p9), %s3072_s10, 8192, %s419_s18, [#allocation7], %s3091_s24, %s3091_s24, %s3090_s27  }
  0x37   : > { %s2247_s26 = scalar_lea.vmem %s435_s6, 4096  ;;  %p2255_p3 = scmp.lt.s32.totalorder %s435_s6, %s435_s6 }
  0x38   : > { %p2248_p0 = scmp.ne.s32.totalorder %s435_s6, %s2247_s26  ;;  %p2256_p8 = scmp.lt.s32.totalorder %s2247_s26, %s2247_s26 }
  0x3a   : > { %p2250_p1 = pnand %p2248_p0, %p2160_p10  ;;  %p2257_p5 = por %p2256_p8, %p2255_p3 }
  0x3c   : > { %p2251_p2 = pneg %p2250_p1 }
  0x3e   : > { %p2258_p11 = pnand %p2257_p5, %p2251_p2 }
  0x40   : > { %2261 = shalt.err (!%p2258_p11)
}
  0x41   : > { %2087 = dma.hbm_to_vmem [thread:$0]  (!%p2452_p9), %s3074_s12, 4096, %s435_s6, [#allocation10], %s2326_s28, %s2326_s28, %s2327_s17  }
  0x42   : > { %p1861_p12 = scmp.ge.s32.totalorder %s2308_s15, 2 }
  0x44   : > { %447 = sbr.rel (%p1861_p12) target bundleno = 83 (0x53), region = 64 }
  0x49   : > { %450 = sbr.rel (!%p2438_p4) target bundleno = 78 (0x4e), region = 68  ;;  %s452_s18 = sand.u32 (%p2438_p4), 1, %s2304_s30  }
  0x4a   : > { %s1863_s27 = sshll.u32 (%p2438_p4), %s2308_s15, 3  ;;  %s1862_s24 = sshll.u32 (%p2438_p4), %s452_s18, 4 }
  0x4b   : > { %s456_s26 = scalar_lea.vmem (%p2438_p4), %s3062_s0, %s1863_s27  ;;  %s454_s3 = scalar_lea.vmem (%p2438_p4), [#allocation2], %s1862_s24 }
  0x4c   : > { %v487_v0 = vld [vmem:[%s456_s26] sm:$0xff] (%p2438_p4)  ;;  %v489_v1 = vld [vmem:[%s456_s26 + $0x10] sm:$0xff] (%p2438_p4) }
  0x4d   : > { %488 = vst [vmem:[%s454_s3] sm:$0xff] (%p2438_p4), %v487_v0  ;;  %490 = vst [vmem:[%s454_s3 + $0x8] sm:$0xff] (%p2438_p4), %v489_v1 }
  0x4e PF: > { %496 = sbr.rel (!%p2438_p4) target bundleno = 83 (0x53), region = 106  ;;  %s498_s6 = sand.u32 (%p2438_p4), 1, %s2304_s30  }
  0x4f   : > { %s1865_s17 = sshll.u32 (%p2438_p4), %s2308_s15, 3  ;;  %s1864_s28 = sshll.u32 (%p2438_p4), %s498_s6, 4 }
  0x50   : > { %s502_s18 = scalar_lea.vmem (%p2438_p4), %s3063_s1, %s1865_s17  ;;  %s500_s27 = scalar_lea.vmem (%p2438_p4), [#allocation3], %s1864_s28 }
  0x51   : > { %v533_v2 = vld [vmem:[%s502_s18] sm:$0xff] (%p2438_p4)  ;;  %v535_v3 = vld [vmem:[%s502_s18 + $0x10] sm:$0xff] (%p2438_p4) }
  0x52   : > { %534 = vst [vmem:[%s500_s27] sm:$0xff] (%p2438_p4), %v533_v2  ;;  %536 = vst [vmem:[%s500_s27 + $0x8] sm:$0xff] (%p2438_p4), %v535_v3 }
  0x53 PF: > { %545 = sbr.rel (%p2444_p7) target bundleno = 1498 (0x5da), region = 144  ;;  %s548_s3 = sand.u32 (!%p2444_p7), 1, %s2300_s29  }
  0x54   : > { %s1867_s21 = sshll.u32 (!%p2444_p7), %s548_s3, 4 }
  0x55   : > { %s550_s15 = scalar_lea.vmem (!%p2444_p7), [#allocation2], %s1867_s21  ;;  %s557_s24 = scalar_lea.vmem (!%p2444_p7), [#allocation3], %s1867_s21 }
  0x58   : > { %2287 = dma.done.wait (%p2088_p6), [#allocation5], 6144  }
  0x59   : > { %2289 = vsyncadd (%p2088_p6), [#allocation5], 4294961152 }
  0x5a   : > { %2291 = dma.done.wait (%p2088_p6), [#allocation7], 12288  }
  0x5b   : > { %2293 = vsyncadd (%p2088_p6), [#allocation7], 4294955008 }
  0x5c   : > { %2295 = dma.done.wait (%p2088_p6), [#allocation10], 4096  }
  0x5d   : > { %2297 = vsyncadd (%p2088_p6), [#allocation10], 4294963200  ;;  %p619_p4 = scmp.lt.s32.totalorder %s2423_s16, 1  ;;  %v627_v4 = vlaneseq  ;;  %v2542_v6 = vld [vmem:[%s550_s15] sm:$0xff]  ;;  %v2544_v7 = vld [vmem:[%s550_s15 + $0x8] sm:$0xff]  ;;  %v2310_v10 = vmov 0.0  }
  0x5e   : > { %v2546_v8 = vld [vmem:[%s557_s24] sm:$0xff]  ;;  %v626_v9 = vld [vmem:[%s557_s24 + $0x8] sm:$0xff]  ;;  %v2314_v11 = vmov 0.0   ;;  %s2548_s26 = smov 0  }
  0x5f   : > { %s3101_s16 = smov (!%p619_p4, %s2423_s16), 1  ;;  %v2535_v5 = vand.u32 127, %v627_v4 }
  0x60   : > { %s1873_s29 = sshll.u32 %s3101_s16, 3 }
  0x61   : > { %s2540_s25 = scalar_lea.vmem %s3076_s14, %s1873_s29 }
  0x62 LB: >> { %v637_v12 = vstv %s2320_s26  ;;  %vm643_vm0 = vcmask 64512   ;;  %v2330_v42 = vmov 0.0   ;;  %s634_s26 = sadd.s32 1, %s2320_s26   ;;  %s2320_s26 = sphi %s2548_s26, %s634_s26   ;;  %v2316_v11 = vphi %v2314_v11, %v2315_v11   ;;  %v2312_v10 = vphi %v2310_v10, %v2311_v10  }
  0x63   : >> { %vm2555_vm1 = vcmp.eq.s32.totalorder %v2535_v5, %v637_v12  ;;  %p631_p6 = scmp.ge.s32.totalorder %s634_s26, 8  }
  0x64   : >> { %v641_v14 = vsel %vm2555_vm1, %v2542_v6, 0  ;;  %v642_v15 = vsel %vm2555_vm1, %v2544_v7, 0  ;;  %v670_v26 = vsel %vm2555_vm1, %v2546_v8, 0.0  ;;  %v671_v27 = vsel %vm2555_vm1, %v626_v9, 0.0  ;;  %v734_v51 = vld [vmem:[%s3064_s2 + $0x170] sm:$0xff] (%p631_p6)  ;;  %v733_v52 = vld [vmem:[%s3064_s2 + $0x168] sm:$0xff] (%p631_p6) }
  0x65   : >> { %v644_v16 = vsel %vm643_vm0, %v641_v14, 0  ;;  %v657_v17 = vsel %vm643_vm0, %v642_v15, 0  ;;  %v672_v28 = vsel %vm643_vm0, %v670_v26, 0.0  ;;  %v675_v29 = vsel %vm643_vm0, %v671_v27, 0.0  ;;  %v731_v53 = vld [vmem:[%s3064_s2 + $0x158] sm:$0xff] (%p631_p6)  ;;  %736 = vmatprep.subr.mxu0 (%p631_p6), %v734_v51  ;;  %v730_v54 = vld [vmem:[%s3064_s2 + $0x150] sm:$0xff] (%p631_p6) }
  0x66   : >> { %v646_v18 = vshrl.u32 %v644_v16, 16  ;;  %v645_v19 = vand.u32 65535, %v644_v16  ;;  %v659_v20 = vshrl.u32 %v657_v17, 16  ;;  %v658_v21 = vand.u32 65535, %v657_v17  ;;  %v735_v55 = vld [vmem:[%s3064_s2 + $0x178] sm:$0xff] (%p631_p6)  ;;  %737 = vmatpush1.msra.mxu0 (%p631_p6), %v733_v52  ;;  %v728_v57 = vld [vmem:[%s3064_s2 + $0x140] sm:$0xff] (%p631_p6) }
  0x67   : > { %v2331_v56 = vmov (%p631_p6), 0.0   ;;  %1989 = vmatprep.subr.mxu1 (%p631_p6), %v735_v55  ;;  %v732_v58 = vld [vmem:[%s3064_s2 + $0x160] sm:$0xff] (%p631_p6)  ;;  %738 = vmatprep.subr.mxu0 (%p631_p6), %v731_v53  ;;  %v727_v59 = vld [vmem:[%s3064_s2 + $0x138] sm:$0xff] (%p631_p6)  ;;  %v729_v60 = vld [vmem:[%s3064_s2 + $0x148] sm:$0xff] (%p631_p6) }
  0x68   : >> { %v648_v22 = vcvt.s32.f32 %v646_v18  ;;  %v647_v23 = vcvt.s32.f32 %v645_v19  ;;  %v661_v24 = vcvt.s32.f32 %v659_v20  ;;  %v660_v25 = vcvt.s32.f32 %v658_v21  ;;  %800 = vmatprep.mubr.f32.mxu0 (%p631_p6), %v2331_v56  ;;  %1990 = vmatpush3.msra.mxu1 (%p631_p6), %v735_v55  ;;  %v725_v61 = vld [vmem:[%s3064_s2 + $0x128] sm:$0xff] (%p631_p6)  ;;  %v724_v62 = vld [vmem:[%s3064_s2 + $0x120] sm:$0xff] (%p631_p6)  ;;  %v726_v63 = vld [vmem:[%s3064_s2 + $0x130] sm:$0xff] (%p631_p6) }
  0x69   : > { %739 = vmatpush1.msra.mxu0 (%p631_p6), %v730_v54  ;;  %1991 = vmatprep.subr.mxu1 (%p631_p6), %v732_v58  ;;  %v722_v0 = vld [vmem:[%s3064_s2 + $0x110] sm:$0xff] (%p631_p6)  ;;  %v721_v1 = vld [vmem:[%s3064_s2 + $0x108] sm:$0xff] (%p631_p6)  ;;  %v723_v2 = vld [vmem:[%s3064_s2 + $0x118] sm:$0xff] (%p631_p6) }
  0x6a   : >> { %651 = vadd.xlane.f32.xlu0 %v648_v22  ;;  %649 = vadd.xlane.f32.xlu1 %v647_v23  ;;  %v719_v3 = vld [vmem:[%s3064_s2 + $0xf8] sm:$0xff] (%p631_p6)  ;;  %v720_v6 = vld [vmem:[%s3064_s2 + $0x100] sm:$0xff] (%p631_p6)  ;;  %v717_v9 = vld [vmem:[%s3064_s2 + $0xe8] sm:$0xff] (%p631_p6) }
  0x6b   : > { %740 = vmatprep.subr.mxu0 (%p631_p6), %v728_v57  ;;  %1992 = vmatpush3.msra.mxu1 (%p631_p6), %v732_v58  ;;  %v716_v7 = vld [vmem:[%s3064_s2 + $0xe0] sm:$0xff] (%p631_p6)  ;;  %v715_v8 = vld [vmem:[%s3064_s2 + $0xd8] sm:$0xff] (%p631_p6)  ;;  %v714_v12 = vld [vmem:[%s3064_s2 + $0xd0] sm:$0xff] (%p631_p6) }
  0x6c   : > { %741 = vmatpush1.msra.mxu0 (%p631_p6), %v727_v59  ;;  %1993 = vmatprep.subr.mxu1 (%p631_p6), %v729_v60  ;;  %v710_v13 = vld [vmem:[%s3064_s2 + $0xb0] sm:$0xff] (%p631_p6)  ;;  %v709_v14 = vld [vmem:[%s3064_s2 + $0xa8] sm:$0xff] (%p631_p6)  ;;  %v711_v15 = vld [vmem:[%s3064_s2 + $0xb8] sm:$0xff] (%p631_p6) }
  0x6d   : > { %742 = vmatprep.subr.mxu0 (%p631_p6), %v725_v61  ;;  %1994 = vmatpush3.msra.mxu1 (%p631_p6), %v729_v60  ;;  %v707_v16 = vld [vmem:[%s3064_s2 + $0x98] sm:$0xff] (%p631_p6)  ;;  %v706_v17 = vld [vmem:[%s3064_s2 + $0x90] sm:$0xff] (%p631_p6)  ;;  %v708_v18 = vld [vmem:[%s3064_s2 + $0xa0] sm:$0xff] (%p631_p6) }
  0x6e   : >> { %664 = vadd.xlane.f32.xlu0 %v661_v24  ;;  %662 = vadd.xlane.f32.xlu1 %v660_v25  ;;  %v704_v19 = vld [vmem:[%s3064_s2 + $0x80] sm:$0xff] (%p631_p6)  ;;  %v703_v20 = vld [vmem:[%s3064_s2 + $0x78] sm:$0xff] (%p631_p6)  ;;  %v705_v21 = vld [vmem:[%s3064_s2 + $0x88] sm:$0xff] (%p631_p6) }
  0x6f   : > { %743 = vmatpush1.msra.mxu0 (%p631_p6), %v724_v62  ;;  %1995 = vmatprep.subr.mxu1 (%p631_p6), %v726_v63  ;;  %v701_v22 = vld [vmem:[%s3064_s2 + $0x68] sm:$0xff] (%p631_p6)  ;;  %v700_v23 = vld [vmem:[%s3064_s2 + $0x60] sm:$0xff] (%p631_p6)  ;;  %v702_v24 = vld [vmem:[%s3064_s2 + $0x70] sm:$0xff] (%p631_p6) }
  0x70   : > { %744 = vmatprep.subr.mxu0 (%p631_p6), %v722_v0  ;;  %1996 = vmatpush3.msra.mxu1 (%p631_p6), %v726_v63  ;;  %v698_v25 = vld [vmem:[%s3064_s2 + $0x50] sm:$0xff] (%p631_p6)  ;;  %v697_v26 = vld [vmem:[%s3064_s2 + $0x48] sm:$0xff] (%p631_p6)  ;;  %v699_v27 = vld [vmem:[%s3064_s2 + $0x58] sm:$0xff] (%p631_p6) }
  0x71   : > { %745 = vmatpush1.msra.mxu0 (%p631_p6), %v721_v1  ;;  %1997 = vmatprep.subr.mxu1 (%p631_p6), %v723_v2  ;;  %v899_v51 = vld [vmem:[#allocation4 + $0x58] sm:$0xff] (%p631_p6)  ;;  %v898_v53 = vld [vmem:[#allocation4 + $0x50] sm:$0xff] (%p631_p6)  ;;  %v913_v55 = vld [vmem:[#allocation4 + $0xc8] sm:$0xff] (%p631_p6) }
  0x72   : >> { %673 = vadd.xlane.f32.xlu0 %v672_v28  ;;  %676 = vadd.xlane.f32.xlu1 %v675_v29  ;;  %v695_v28 = vld [vmem:[%s3064_s2 + $0x38] sm:$0xff] (%p631_p6)  ;;  %v694_v29 = vld [vmem:[%s3064_s2 + $0x30] sm:$0xff] (%p631_p6)  ;;  %v897_v57 = vld [vmem:[#allocation4 + $0x48] sm:$0xff] (%p631_p6) }
  0x73   : > { %746 = vmatprep.subr.mxu0 (%p631_p6), %v719_v3  ;;  %1998 = vmatpush3.msra.mxu1 (%p631_p6), %v723_v2  ;;  %v931_v52 = vld [vmem:[#allocation4 + $0x158] sm:$0xff] (%p631_p6)  ;;  %v930_v54 = vld [vmem:[#allocation4 + $0x150] sm:$0xff] (%p631_p6)  ;;  %v929_v58 = vld [vmem:[#allocation4 + $0x148] sm:$0xff] (%p631_p6) }
  0x74   : > { %1999 = vmatprep.subr.mxu1 (%p631_p6), %v720_v6  ;;  %v912_v59 = vld [vmem:[#allocation4 + $0xc0] sm:$0xff] (%p631_p6)  ;;  %v911_v62 = vld [vmem:[#allocation4 + $0xb8] sm:$0xff] (%p631_p6)  ;;  %v910_v1 = vld [vmem:[#allocation4 + $0xb0] sm:$0xff] (%p631_p6) }
  0x75   : > { %2000 = vmatpush3.msra.mxu1 (%p631_p6), %v720_v6  ;;  %v896_v60 = vld [vmem:[#allocation4 + $0x40] sm:$0xff] (%p631_p6)  ;;  %v895_v63 = vld [vmem:[#allocation4 + $0x38] sm:$0xff] (%p631_p6)  ;;  %v894_v2 = vld [vmem:[#allocation4 + $0x30] sm:$0xff] (%p631_p6) }
  0x76   : > { %2001 = vmatprep.subr.mxu1 (%p631_p6), %v717_v9  ;;  %v928_v61 = vld [vmem:[#allocation4 + $0x140] sm:$0xff] (%p631_p6)  ;;  %v927_v0 = vld [vmem:[#allocation4 + $0x138] sm:$0xff] (%p631_p6)  ;;  %v926_v3 = vld [vmem:[#allocation4 + $0x130] sm:$0xff] (%p631_p6) }
  0x77   : > { %2002 = vmatpush3.msra.mxu1 (%p631_p6), %v717_v9  ;;  %v893_v6 = vld [vmem:[#allocation4 + $0x28] sm:$0xff] (%p631_p6)  ;;  %v892_v9 = vld [vmem:[#allocation4 + $0x20] sm:$0xff] (%p631_p6) }
  0x78   : > { %2003 = vmatprep.subr.mxu1 (%p631_p6), %v714_v12 }
  0x79   : > { %2004 = vmatpush3.msra.mxu1 (%p631_p6), %v714_v12  ;;  %v891_v12 = vld [vmem:[#allocation4 + $0x18] sm:$0xff] (%p631_p6) }
  0x7a   : > { %2005 = vmatprep.subr.mxu1 (%p631_p6), %v711_v15 }
  0x7b   : > { %2006 = vmatpush3.msra.mxu1 (%p631_p6), %v711_v15  ;;  %v890_v15 = vld [vmem:[#allocation4 + $0x10] sm:$0xff] (%p631_p6) }
  0x7c   : > { %2007 = vmatprep.subr.mxu1 (%p631_p6), %v708_v18 }
  0x7d   : > { %2008 = vmatpush3.msra.mxu1 (%p631_p6), %v708_v18  ;;  %v922_v18 = vld [vmem:[#allocation4 + $0x110] sm:$0xff] (%p631_p6) }
  0x7e   : > { %2009 = vmatprep.subr.mxu1 (%p631_p6), %v705_v21 }
  0x7f   : > { %2010 = vmatpush3.msra.mxu1 (%p631_p6), %v705_v21  ;;  %v921_v21 = vld [vmem:[#allocation4 + $0x108] sm:$0xff] (%p631_p6) }
  0x80   : > { %2011 = vmatprep.subr.mxu1 (%p631_p6), %v702_v24 }
  0x81   : > { %2012 = vmatpush3.msra.mxu1 (%p631_p6), %v702_v24  ;;  %v1158_v24 = vld [vmem:[#allocation6 + $0xf8] sm:$0xff] (%p631_p6) }
  0x82   : > { %2013 = vmatprep.subr.mxu1 (%p631_p6), %v699_v27 }
  0x83   : > { %2014 = vmatpush3.msra.mxu1 (%p631_p6), %v699_v27 }
  0xf3   : >> { %v652_v30 = vpop.xlane.xlu0 %651  ;;  %v650_v31 = vpop.xlane.xlu1 %649 }
  0xf4   : >> { %v654_v32 = vcvt.f32.s32 %v652_v30  ;;  %v653_v33 = vcvt.f32.s32 %v650_v31  ;;  %v696_v30 = vld [vmem:[%s3064_s2 + $0x40] sm:$0xff] (%p631_p6) }
  0xf5   : > { %v692_v31 = vld [vmem:[%s3064_s2 + $0x20] sm:$0xff] (%p631_p6)  ;;  %2015 = vmatprep.subr.mxu1 (%p631_p6), %v696_v30 }
  0xf6   : >> { %v655_v34 = vshll.u32 %v654_v32, 16  ;;  %v691_v32 = vld [vmem:[%s3064_s2 + $0x18] sm:$0xff] (%p631_p6)  ;;  %2016 = vmatpush3.msra.mxu1 (%p631_p6), %v696_v30  ;;  %v1125_v30 = vld [vmem:[%s3067_s5 + $0xf0] sm:$0xff] (%p631_p6) }
  0xf7   : >> { %v665_v35 = vpop.xlane.xlu0 %664  ;;  %v663_v36 = vpop.xlane.xlu1 %662 }
  0xf8   : >> { %v656_v37 = vadd.s32 %v655_v34, %v653_v33  ;;  %v667_v38 = vcvt.f32.s32 %v665_v35  ;;  %v666_v39 = vcvt.f32.s32 %v663_v36  ;;  %v693_v33 = vld [vmem:[%s3064_s2 + $0x28] sm:$0xff] (%p631_p6)  ;;  %v688_v35 = vld [vmem:[%s3064_s2] sm:$0xff] (%p631_p6)  ;;  %v690_v36 = vld [vmem:[%s3064_s2 + $0x10] sm:$0xff] (%p631_p6) }
  0xf9   : > { %v689_v34 = vld [vmem:[%s3064_s2 + $0x8] sm:$0xff] (%p631_p6)  ;;  %2017 = vmatprep.subr.mxu1 (%p631_p6), %v693_v33 }
  0xfa   : >> { %v668_v40 = vshll.u32 %v667_v38, 16  ;;  %vm678_vm2 = vcmp.eq.s32.totalorder %v656_v37, %v2535_v5  ;;  %2018 = vmatpush3.msra.mxu1 (%p631_p6), %v693_v33  ;;  %v919_v37 = vld [vmem:[#allocation4 + $0xf8] sm:$0xff] (%p631_p6)  ;;  %v1124_v33 = vld [vmem:[%s3067_s5 + $0xe8] sm:$0xff] (%p631_p6) }
  0xfb   : >> { %v674_v41 = vpop.xlane.xlu0 %673  ;;  %v1874_v43 = vsel %vm678_vm2, 1.0, %v2330_v42  ;;  %v677_v46 = vpop.xlane.xlu1 %676  ;;  %2019 = vmatprep.subr.mxu1 (%p631_p6), %v690_v36  ;;  %v935_v38 = vld [vmem:[#allocation4 + $0x178] sm:$0xff] (%p631_p6) }
  0xfc   : >> { %v669_v44 = vadd.s32 %v668_v40, %v666_v39  ;;  %v684_v45 = vmul.f32 %v1874_v43, %v674_v41  ;;  %2020 = vmatpush3.msra.mxu1 (%p631_p6), %v690_v36  ;;  %v903_v39 = vld [vmem:[#allocation4 + $0x78] sm:$0xff] (%p631_p6)  ;;  %v918_v40 = vld [vmem:[#allocation4 + $0xf0] sm:$0xff] (%p631_p6)  ;;  %v917_v43 = vld [vmem:[#allocation4 + $0xe8] sm:$0xff] (%p631_p6) }
  0xfd   : > { %v902_v41 = vld [vmem:[#allocation4 + $0x70] sm:$0xff] (%p631_p6)  ;;  %2024 = vmatprep.subr.mxu1 (%p631_p6), %v935_v38  ;;  %v1122_v36 = vld [vmem:[%s3067_s5 + $0xd8] sm:$0xff] (%p631_p6) }
  0xfe   : >> { %v2575_v11 = vadd.f32 %v2316_v11, %v684_v45   ;;  %vm679_vm3 = vcmp.eq.s32.totalorder %v669_v44, %v2535_v5  ;;  %v718_v5 = vld [vmem:[%s3064_s2 + $0xf0] sm:$0xff] (%p631_p6)  ;;  %v901_v44 = vld [vmem:[#allocation4 + $0x68] sm:$0xff] (%p631_p6) }
  0xff   : >> { %v1875_v48 = vsel %vm679_vm3, 1.0, %v2330_v42  ;;  %747 = vmatpush1.msra.mxu0 (%p631_p6), %v718_v5  ;;  %v934_v42 = vld [vmem:[#allocation4 + $0x170] sm:$0xff] (%p631_p6)  ;;  %v933_v45 = vld [vmem:[#allocation4 + $0x168] sm:$0xff] (%p631_p6) }
 0x100   : >> { %v3094_v47 = vmov %v2575_v11  ;;  %v685_v49 = vmul.f32 %v1875_v48, %v677_v46  ;;  %748 = vmatprep.subr.mxu0 (%p631_p6), %v716_v7  ;;  %v916_v46 = vld [vmem:[#allocation4 + $0xe0] sm:$0xff] (%p631_p6)  ;;  %v909_v5 = vld [vmem:[#allocation4 + $0xa8] sm:$0xff] (%p631_p6) }
 0x101   : >> { %v2315_v11 = vmov %v3094_v47   ;;  %633 = sbr.rel (!%p631_p6) target bundleno = 98 (0x62), region = 219  ;;  %2021 = vmatprep.mubr.f32.mxu1 (%p631_p6), %v3094_v47  ;;  %749 = vmatpush1.msra.mxu0 (%p631_p6), %v715_v8  ;;  %v932_v48 = vld [vmem:[#allocation4 + $0x160] sm:$0xff] (%p631_p6)  ;;  %v925_v7 = vld [vmem:[#allocation4 + $0x128] sm:$0xff] (%p631_p6) }
 0x102   : >> { %v2578_v10 = vadd.f32 %v2312_v10, %v685_v49   ;;  %v712_v11 = vld [vmem:[%s3064_s2 + $0xc0] sm:$0xff] (%p631_p6)  ;;  %v915_v49 = vld [vmem:[#allocation4 + $0xd8] sm:$0xff] (%p631_p6) }
 0x103   : > { %v908_v8 = vld [vmem:[#allocation4 + $0xa0] sm:$0xff] (%p631_p6) }
 0x104   : >> { %v3095_v50 = vmov %v2578_v10 }
 0x105   : >> { %v2311_v10 = vmov %v3095_v50   ;;  %2022 = vmatmul.mubr.f32.vlgmr.msra.gmra.mxu1 (%p631_p6), %v3095_v50 }
 0x106   : > { %v713_v10 = vld [vmem:[%s3064_s2 + $0xc8] sm:$0xff]  ;;  %2025 = vmatpush3.msra.mxu1 %v935_v38  ;;  %v1121_v38 = vld [vmem:[%s3067_s5 + $0xd0] sm:$0xff] }
 0x107   : > { %750 = vmatprep.subr.mxu0 %v713_v10  ;;  %2026 = vmatprep.subr.mxu1 %v934_v42  ;;  %v924_v10 = vld [vmem:[#allocation4 + $0x120] sm:$0xff] }
 0x108   : > { %751 = vmatpush1.msra.mxu0 %v712_v11  ;;  %2027 = vmatpush3.msra.mxu1 %v934_v42  ;;  %v907_v11 = vld [vmem:[#allocation4 + $0x98] sm:$0xff] }
 0x109   : > { %752 = vmatprep.subr.mxu0 %v710_v13  ;;  %2028 = vmatprep.subr.mxu1 %v933_v45  ;;  %v923_v13 = vld [vmem:[#allocation4 + $0x118] sm:$0xff] }
 0x10a   : > { %753 = vmatpush1.msra.mxu0 %v709_v14  ;;  %2029 = vmatpush3.msra.mxu1 %v933_v45  ;;  %v906_v14 = vld [vmem:[#allocation4 + $0x90] sm:$0xff]  ;;  %v1118_v42 = vld [vmem:[%s3067_s5 + $0xb8] sm:$0xff]  ;;  %v1152_v45 = vld [vmem:[#allocation6 + $0xc8] sm:$0xff] }
 0x10b   : > { %754 = vmatprep.subr.mxu0 %v707_v16  ;;  %2030 = vmatprep.subr.mxu1 %v932_v48  ;;  %v905_v16 = vld [vmem:[#allocation4 + $0x88] sm:$0xff] }
 0x10c   : > { %755 = vmatpush1.msra.mxu0 %v706_v17  ;;  %2031 = vmatpush3.msra.mxu1 %v932_v48  ;;  %v889_v17 = vld [vmem:[#allocation4 + $0x8] sm:$0xff]  ;;  %v1150_v48 = vld [vmem:[#allocation6 + $0xb8] sm:$0xff] }
 0x10d   : > { %756 = vmatprep.subr.mxu0 %v704_v19  ;;  %2032 = vmatprep.subr.mxu1 %v931_v52  ;;  %v904_v19 = vld [vmem:[#allocation4 + $0x80] sm:$0xff] }
 0x10e   : > { %757 = vmatpush1.msra.mxu0 %v703_v20  ;;  %2033 = vmatpush3.msra.mxu1 %v931_v52  ;;  %v888_v20 = vld [vmem:[#allocation4] sm:$0xff]  ;;  %v1113_v52 = vld [vmem:[%s3067_s5 + $0x90] sm:$0xff] }
 0x10f   : > { %758 = vmatprep.subr.mxu0 %v701_v22  ;;  %2034 = vmatprep.subr.mxu1 %v930_v54  ;;  %v920_v22 = vld [vmem:[#allocation4 + $0x100] sm:$0xff] }
 0x110   : > { %759 = vmatpush1.msra.mxu0 %v700_v23  ;;  %2035 = vmatpush3.msra.mxu1 %v930_v54  ;;  %v1126_v23 = vld [vmem:[%s3067_s5 + $0xf8] sm:$0xff]  ;;  %v1147_v54 = vld [vmem:[#allocation6 + $0xa0] sm:$0xff] }
 0x111   : > { %760 = vmatprep.subr.mxu0 %v698_v25  ;;  %2036 = vmatprep.subr.mxu1 %v929_v58 }
 0x112   : > { %761 = vmatpush1.msra.mxu0 %v697_v26  ;;  %2037 = vmatpush3.msra.mxu1 %v929_v58  ;;  %v1110_v58 = vld [vmem:[%s3067_s5 + $0x78] sm:$0xff] }
 0x113   : > { %762 = vmatprep.subr.mxu0 %v695_v28  ;;  %2038 = vmatprep.subr.mxu1 %v928_v61  ;;  %v1157_v28 = vld [vmem:[#allocation6 + $0xf0] sm:$0xff] }
 0x114   : > { %763 = vmatpush1.msra.mxu0 %v694_v29  ;;  %2039 = vmatpush3.msra.mxu1 %v928_v61  ;;  %v1144_v61 = vld [vmem:[#allocation6 + $0x88] sm:$0xff] }
 0x115   : > { %764 = vmatprep.subr.mxu0 %v692_v31  ;;  %2040 = vmatprep.subr.mxu1 %v927_v0  ;;  %v1156_v31 = vld [vmem:[#allocation6 + $0xe8] sm:$0xff] }
 0x116   : > { %765 = vmatpush1.msra.mxu0 %v691_v32  ;;  %2041 = vmatpush3.msra.mxu1 %v927_v0  ;;  %v1107_v0 = vld [vmem:[%s3067_s5 + $0x60] sm:$0xff] }
 0x117   : > { %766 = vmatprep.subr.mxu0 %v689_v34  ;;  %2042 = vmatprep.subr.mxu1 %v926_v3  ;;  %v1123_v34 = vld [vmem:[%s3067_s5 + $0xe0] sm:$0xff] }
 0x118   : > { %767 = vmatpush1.msra.mxu0 %v688_v35  ;;  %2043 = vmatpush3.msra.mxu1 %v926_v3  ;;  %v1141_v3 = vld [vmem:[#allocation6 + $0x70] sm:$0xff] }
 0x119   : > { %801 = vmatmul.mubr.f32.vlgmr.msra.gmra.mxu0 %v3094_v47  ;;  %1898 = vmatprep.subr.mxu0 %v919_v37  ;;  %v900_v47 = vld [vmem:[#allocation4 + $0x60] sm:$0xff] }
 0x11a   : > { %806 = vmatprep.mubr.f32.mxu0 %v2331_v56  ;;  %1899 = vmatpush3.msra.mxu0 %v903_v39  ;;  %v1155_v37 = vld [vmem:[#allocation6 + $0xe0] sm:$0xff]  ;;  %v1154_v39 = vld [vmem:[#allocation6 + $0xd8] sm:$0xff] }
 0x11b   : > { %1900 = vmatprep.subr.mxu0 %v918_v40  ;;  %2044 = vmatprep.subr.mxu1 %v925_v7  ;;  %v1120_v40 = vld [vmem:[%s3067_s5 + $0xc8] sm:$0xff] }
 0x11c   : > { %1901 = vmatpush3.msra.mxu0 %v902_v41  ;;  %2045 = vmatpush3.msra.mxu1 %v925_v7  ;;  %v1119_v41 = vld [vmem:[%s3067_s5 + $0xc0] sm:$0xff]  ;;  %v1104_v7 = vld [vmem:[%s3067_s5 + $0x48] sm:$0xff] }
 0x11d   : > { %807 = vmatmul.mubr.f32.gmra.mxu0 %v3095_v50  ;;  %1902 = vmatprep.subr.mxu0 %v917_v43  ;;  %v914_v50 = vld [vmem:[#allocation4 + $0xd0] sm:$0xff] }
 0x11e   : > { %1903 = vmatpush3.msra.mxu0 %v901_v44  ;;  %2046 = vmatprep.subr.mxu1 %v924_v10  ;;  %v1153_v43 = vld [vmem:[#allocation6 + $0xd0] sm:$0xff] }
 0x11f   : > { %1904 = vmatprep.subr.mxu0 %v916_v46  ;;  %2047 = vmatpush3.msra.mxu1 %v924_v10  ;;  %v1117_v44 = vld [vmem:[%s3067_s5 + $0xb0] sm:$0xff]  ;;  %v1116_v46 = vld [vmem:[%s3067_s5 + $0xa8] sm:$0xff]  ;;  %v1138_v10 = vld [vmem:[#allocation6 + $0x58] sm:$0xff] }
 0x120   : > { %1905 = vmatpush3.msra.mxu0 %v900_v47  ;;  %2048 = vmatprep.subr.mxu1 %v923_v13  ;;  %v1151_v47 = vld [vmem:[#allocation6 + $0xc0] sm:$0xff] }
 0x121   : > { %1906 = vmatprep.subr.mxu0 %v915_v49  ;;  %2049 = vmatpush3.msra.mxu1 %v923_v13  ;;  %v1114_v49 = vld [vmem:[%s3067_s5 + $0x98] sm:$0xff]  ;;  %v1101_v13 = vld [vmem:[%s3067_s5 + $0x30] sm:$0xff] }
 0x122   : > { %1907 = vmatpush3.msra.mxu0 %v899_v51  ;;  %2050 = vmatprep.subr.mxu1 %v922_v18  ;;  %v1149_v51 = vld [vmem:[#allocation6 + $0xb0] sm:$0xff] }
 0x123   : > { %1908 = vmatprep.subr.mxu0 %v914_v50  ;;  %2051 = vmatpush3.msra.mxu1 %v922_v18  ;;  %v1148_v50 = vld [vmem:[#allocation6 + $0xa8] sm:$0xff]  ;;  %v1134_v18 = vld [vmem:[#allocation6 + $0x38] sm:$0xff] }
 0x124   : > { %1909 = vmatpush3.msra.mxu0 %v898_v53  ;;  %2052 = vmatprep.subr.mxu1 %v921_v21  ;;  %v1112_v53 = vld [vmem:[%s3067_s5 + $0x88] sm:$0xff] }
 0x125   : > { %1910 = vmatprep.subr.mxu0 %v913_v55  ;;  %2053 = vmatpush3.msra.mxu1 %v921_v21  ;;  %v1111_v55 = vld [vmem:[%s3067_s5 + $0x80] sm:$0xff]  ;;  %v1097_v21 = vld [vmem:[%s3067_s5 + $0x10] sm:$0xff] }
 0x126   : > { %1911 = vmatpush3.msra.mxu0 %v897_v57  ;;  %2054 = vmatprep.subr.mxu1 %v920_v22  ;;  %v1146_v57 = vld [vmem:[#allocation6 + $0x98] sm:$0xff] }
 0x127   : > { %1912 = vmatprep.subr.mxu0 %v912_v59  ;;  %2055 = vmatpush3.msra.mxu1 %v920_v22  ;;  %v1145_v59 = vld [vmem:[#allocation6 + $0x90] sm:$0xff]  ;;  %v1132_v22 = vld [vmem:[#allocation6 + $0x28] sm:$0xff] }
 0x128   : > { %1913 = vmatpush3.msra.mxu0 %v896_v60  ;;  %1230 = vmatprep.subr.mxu1 %v1126_v23  ;;  %v1109_v60 = vld [vmem:[%s3067_s5 + $0x70] sm:$0xff]  ;;  %v1096_v23 = vld [vmem:[%s3067_s5 + $0x8] sm:$0xff] }
 0x129   : > { %1914 = vmatprep.subr.mxu0 %v911_v62  ;;  %v1108_v62 = vld [vmem:[%s3067_s5 + $0x68] sm:$0xff] }
 0x12a   : > { %1915 = vmatpush3.msra.mxu0 %v895_v63  ;;  %v1143_v63 = vld [vmem:[#allocation6 + $0x80] sm:$0xff] }
 0x12b   : > { %1916 = vmatprep.subr.mxu0 %v910_v1  ;;  %v1142_v1 = vld [vmem:[#allocation6 + $0x78] sm:$0xff] }
 0x12c   : > { %1917 = vmatpush3.msra.mxu0 %v894_v2  ;;  %v1106_v2 = vld [vmem:[%s3067_s5 + $0x58] sm:$0xff] }
 0x12d   : > { %1918 = vmatprep.subr.mxu0 %v909_v5  ;;  %v1105_v5 = vld [vmem:[%s3067_s5 + $0x50] sm:$0xff] }
 0x12e   : > { %1919 = vmatpush3.msra.mxu0 %v893_v6  ;;  %v1140_v6 = vld [vmem:[#allocation6 + $0x68] sm:$0xff] }
 0x12f   : > { %1920 = vmatprep.subr.mxu0 %v908_v8  ;;  %v1139_v8 = vld [vmem:[#allocation6 + $0x60] sm:$0xff] }
 0x130   : > { %1921 = vmatpush3.msra.mxu0 %v892_v9  ;;  %v1103_v9 = vld [vmem:[%s3067_s5 + $0x40] sm:$0xff] }
 0x131   : > { %1922 = vmatprep.subr.mxu0 %v907_v11  ;;  %v1102_v11 = vld [vmem:[%s3067_s5 + $0x38] sm:$0xff] }
 0x132   : > { %1923 = vmatpush3.msra.mxu0 %v891_v12  ;;  %v1137_v12 = vld [vmem:[#allocation6 + $0x50] sm:$0xff] }
 0x133   : > { %1924 = vmatprep.subr.mxu0 %v906_v14  ;;  %v1136_v14 = vld [vmem:[#allocation6 + $0x48] sm:$0xff] }
 0x134   : > { %1925 = vmatpush3.msra.mxu0 %v890_v15  ;;  %v1100_v15 = vld [vmem:[%s3067_s5 + $0x28] sm:$0xff] }
 0x135   : > { %1926 = vmatprep.subr.mxu0 %v905_v16  ;;  %v1135_v16 = vld [vmem:[#allocation6 + $0x40] sm:$0xff] }
 0x136   : > { %1927 = vmatpush3.msra.mxu0 %v889_v17  ;;  %v1099_v17 = vld [vmem:[%s3067_s5 + $0x20] sm:$0xff] }
 0x137   : > { %1928 = vmatprep.subr.mxu0 %v904_v19  ;;  %v1098_v19 = vld [vmem:[%s3067_s5 + $0x18] sm:$0xff] }
 0x138   : > { %1929 = vmatpush3.msra.mxu0 %v888_v20  ;;  %v1133_v20 = vld [vmem:[#allocation6 + $0x30] sm:$0xff] }
 0x139   : > { %1159 = vmatprep.subr.mxu0 %v1158_v24  ;;  %v1131_v24 = vld [vmem:[#allocation6 + $0x20] sm:$0xff] }
 0x1c5   : > { %v2023_v26 = vpop.f32.mrf.mxu1 }
 0x1c7   : > { %v879_v29 = vpop.f32.mrf.mxu1 }
 0x1c8   : > { %2056 = vmatprep.mubr.f32.mxu1 %v879_v29  ;;  %v1127_v29 = vld [vmem:[#allocation6] sm:$0xff] }
 0x1c9   : > { %2057 = vmatmul.mubr.f32.vlgmr.msra.gmra.mxu1 %v2023_v26  ;;  %v1130_v26 = vld [vmem:[#allocation6 + $0x18] sm:$0xff] }
 0x1ca   : > { %1231 = vmatpush1.msra.mxu1 %v1125_v30  ;;  %1294 = vmatprep.mubr.f32.mxu1 %v2331_v56  ;;  %v1348_v30 = vld [vmem:[%s3070_s8 + $0xf8] sm:$0xff] }
 0x1cb   : > { %1232 = vmatprep.subr.mxu1 %v1124_v33 }
 0x1cc   : > { %1233 = vmatpush1.msra.mxu1 %v1123_v34  ;;  %v1876_v34 = vld [vmem:[%s3066_s4] ss:$0 sm:$0xff] }
 0x1cd   : > { %1234 = vmatprep.subr.mxu1 %v1122_v36 }
 0x1ce   : > { %1235 = vmatpush1.msra.mxu1 %v1121_v38 }
 0x1cf   : > { %1236 = vmatprep.subr.mxu1 %v1120_v40 }
 0x1d0   : > { %1237 = vmatpush1.msra.mxu1 %v1119_v41 }
 0x1d1   : > { %1238 = vmatprep.subr.mxu1 %v1118_v42 }
 0x1d2   : > { %1239 = vmatpush1.msra.mxu1 %v1117_v44 }
 0x1d3   : > { %1240 = vmatprep.subr.mxu1 %v1116_v46 }
 0x1d9   : > { %v802_v25 = vpop.f32.mrf.mxu0 }
 0x1db   : > { %v804_v27 = vpop.f32.mrf.mxu0 }
 0x1dc   : > { %1007 = vmatprep.mubr.f32.mxu0 %v804_v27  ;;  %v1129_v27 = vld [vmem:[#allocation6 + $0x10] sm:$0xff] }
 0x1dd   : > { %v808_v32 = vpop.f32.mrf.mxu0  ;;  %1008 = vmatmul.mubr.f32.vlgmr.msra.gmra.mxu0 %v802_v25  ;;  %v1095_v25 = vld [vmem:[%s3067_s5] sm:$0xff] }
 0x1de   : > { %1160 = vmatpush1.msra.mxu0 %v1157_v28  ;;  %v1128_v28 = vld [vmem:[#allocation6 + $0x8] sm:$0xff] }
 0x1df   : > { %v810_v35 = vpop.f32.mrf.mxu0  ;;  %1161 = vmatprep.subr.mxu0 %v1156_v31 }
 0x1e0   : > { %1012 = vmatprep.mubr.f32.mxu0 %v810_v35  ;;  %1162 = vmatpush1.msra.mxu0 %v1155_v37 }
 0x1e1   : > { %1013 = vmatmul.mubr.f32.gmra.mxu0 %v808_v32  ;;  %1163 = vmatprep.subr.mxu0 %v1154_v39 }
 0x1e2   : > { %1223 = vmatprep.mubr.f32.mxu0 %v2331_v56  ;;  %1164 = vmatpush1.msra.mxu0 %v1153_v43  ;;  %v1115_v56 = vld [vmem:[%s3067_s5 + $0xa0] sm:$0xff] }
 0x1e3   : > { %1165 = vmatprep.subr.mxu0 %v1152_v45  ;;  %1241 = vmatpush1.msra.mxu1 %v1115_v56  ;;  %v1347_v45 = vld [vmem:[%s3070_s8 + $0xf0] sm:$0xff]  ;;  %v1345_v56 = vld [vmem:[%s3070_s8 + $0xe0] sm:$0xff] }
 0x1e4   : > { %1166 = vmatpush1.msra.mxu0 %v1151_v47  ;;  %1242 = vmatprep.subr.mxu1 %v1114_v49  ;;  %v1346_v47 = vld [vmem:[%s3070_s8 + $0xe8] sm:$0xff]  ;;  %v1343_v49 = vld [vmem:[%s3070_s8 + $0xd0] sm:$0xff] }
 0x1e5   : > { %1167 = vmatprep.subr.mxu0 %v1150_v48  ;;  %1243 = vmatpush1.msra.mxu1 %v1113_v52  ;;  %v1344_v48 = vld [vmem:[%s3070_s8 + $0xd8] sm:$0xff]  ;;  %v1341_v52 = vld [vmem:[%s3070_s8 + $0xc0] sm:$0xff] }
 0x1e6   : > { %1168 = vmatpush1.msra.mxu0 %v1149_v51  ;;  %1244 = vmatprep.subr.mxu1 %v1112_v53  ;;  %v1342_v51 = vld [vmem:[%s3070_s8 + $0xc8] sm:$0xff]  ;;  %v1339_v53 = vld [vmem:[%s3070_s8 + $0xb0] sm:$0xff] }
 0x1e7   : > { %1169 = vmatprep.subr.mxu0 %v1148_v50  ;;  %1245 = vmatpush1.msra.mxu1 %v1111_v55  ;;  %v1340_v50 = vld [vmem:[%s3070_s8 + $0xb8] sm:$0xff]  ;;  %v1337_v55 = vld [vmem:[%s3070_s8 + $0xa0] sm:$0xff] }
 0x1e8   : > { %1170 = vmatpush1.msra.mxu0 %v1147_v54  ;;  %1246 = vmatprep.subr.mxu1 %v1110_v58  ;;  %v1338_v54 = vld [vmem:[%s3070_s8 + $0xa8] sm:$0xff]  ;;  %v1335_v58 = vld [vmem:[%s3070_s8 + $0x90] sm:$0xff] }
 0x1e9   : > { %1171 = vmatprep.subr.mxu0 %v1146_v57  ;;  %1247 = vmatpush1.msra.mxu1 %v1109_v60  ;;  %v1336_v57 = vld [vmem:[%s3070_s8 + $0x98] sm:$0xff]  ;;  %v1333_v60 = vld [vmem:[%s3070_s8 + $0x80] sm:$0xff] }
 0x1ea   : > { %1172 = vmatpush1.msra.mxu0 %v1145_v59  ;;  %1248 = vmatprep.subr.mxu1 %v1108_v62  ;;  %v1334_v59 = vld [vmem:[%s3070_s8 + $0x88] sm:$0xff]  ;;  %v1331_v62 = vld [vmem:[%s3070_s8 + $0x70] sm:$0xff] }
 0x1eb   : > { %1173 = vmatprep.subr.mxu0 %v1144_v61  ;;  %1249 = vmatpush1.msra.mxu1 %v1107_v0  ;;  %v1332_v61 = vld [vmem:[%s3070_s8 + $0x78] sm:$0xff]  ;;  %v1329_v0 = vld [vmem:[%s3070_s8 + $0x60] sm:$0xff] }
 0x1ec   : > { %1174 = vmatpush1.msra.mxu0 %v1143_v63  ;;  %1250 = vmatprep.subr.mxu1 %v1106_v2  ;;  %v1330_v63 = vld [vmem:[%s3070_s8 + $0x68] sm:$0xff]  ;;  %v1327_v2 = vld [vmem:[%s3070_s8 + $0x50] sm:$0xff] }
 0x1ed   : > { %1175 = vmatprep.subr.mxu0 %v1142_v1  ;;  %1251 = vmatpush1.msra.mxu1 %v1105_v5  ;;  %v1328_v1 = vld [vmem:[%s3070_s8 + $0x58] sm:$0xff]  ;;  %v1325_v5 = vld [vmem:[%s3070_s8 + $0x40] sm:$0xff] }
 0x1ee   : > { %1176 = vmatpush1.msra.mxu0 %v1141_v3  ;;  %1252 = vmatprep.subr.mxu1 %v1104_v7  ;;  %v1326_v3 = vld [vmem:[%s3070_s8 + $0x48] sm:$0xff]  ;;  %v1323_v7 = vld [vmem:[%s3070_s8 + $0x30] sm:$0xff] }
 0x1ef   : > { %1177 = vmatprep.subr.mxu0 %v1140_v6  ;;  %1253 = vmatpush1.msra.mxu1 %v1103_v9  ;;  %v1324_v6 = vld [vmem:[%s3070_s8 + $0x38] sm:$0xff]  ;;  %v1321_v9 = vld [vmem:[%s3070_s8 + $0x20] sm:$0xff] }
 0x1f0   : > { %1178 = vmatpush1.msra.mxu0 %v1139_v8  ;;  %1254 = vmatprep.subr.mxu1 %v1102_v11  ;;  %v1322_v8 = vld [vmem:[%s3070_s8 + $0x28] sm:$0xff]  ;;  %v1319_v11 = vld [vmem:[%s3070_s8 + $0x10] sm:$0xff] }
 0x1f1   : > { %1179 = vmatprep.subr.mxu0 %v1138_v10  ;;  %1255 = vmatpush1.msra.mxu1 %v1101_v13  ;;  %v1320_v10 = vld [vmem:[%s3070_s8 + $0x18] sm:$0xff]  ;;  %v1317_v13 = vld [vmem:[%s3070_s8] sm:$0xff] }
 0x1f2   : > { %1180 = vmatpush1.msra.mxu0 %v1137_v12  ;;  %1256 = vmatprep.subr.mxu1 %v1100_v15  ;;  %v1318_v12 = vld [vmem:[%s3070_s8 + $0x8] sm:$0xff]  ;;  %v1379_v15 = vld [vmem:[%s3070_s8 + $0x1f0] sm:$0xff] }
 0x1f3   : > { %1181 = vmatprep.subr.mxu0 %v1136_v14  ;;  %1257 = vmatpush1.msra.mxu1 %v1099_v17  ;;  %v1380_v14 = vld [vmem:[%s3070_s8 + $0x1f8] sm:$0xff]  ;;  %v1377_v17 = vld [vmem:[%s3070_s8 + $0x1e0] sm:$0xff] }
 0x1f4   : > { %1182 = vmatpush1.msra.mxu0 %v1135_v16  ;;  %1258 = vmatprep.subr.mxu1 %v1098_v19  ;;  %v1378_v16 = vld [vmem:[%s3070_s8 + $0x1e8] sm:$0xff]  ;;  %v1375_v19 = vld [vmem:[%s3070_s8 + $0x1d0] sm:$0xff] }
 0x1f5   : > { %1183 = vmatprep.subr.mxu0 %v1134_v18  ;;  %1259 = vmatpush1.msra.mxu1 %v1097_v21  ;;  %v1376_v18 = vld [vmem:[%s3070_s8 + $0x1d8] sm:$0xff]  ;;  %v1373_v21 = vld [vmem:[%s3070_s8 + $0x1c0] sm:$0xff] }
 0x1f6   : > { %1184 = vmatpush1.msra.mxu0 %v1133_v20  ;;  %1260 = vmatprep.subr.mxu1 %v1096_v23  ;;  %v1374_v20 = vld [vmem:[%s3070_s8 + $0x1c8] sm:$0xff]  ;;  %v1371_v23 = vld [vmem:[%s3070_s8 + $0x1b0] sm:$0xff] }
 0x1f7   : > { %1185 = vmatprep.subr.mxu0 %v1132_v22  ;;  %1261 = vmatpush1.msra.mxu1 %v1095_v25  ;;  %v1372_v22 = vld [vmem:[%s3070_s8 + $0x1b8] sm:$0xff]  ;;  %v1369_v25 = vld [vmem:[%s3070_s8 + $0x1a0] sm:$0xff] }
 0x1f8   : > { %1186 = vmatpush1.msra.mxu0 %v1131_v24  ;;  %v1370_v24 = vld [vmem:[%s3070_s8 + $0x1a8] sm:$0xff] }
 0x1f9   : > { %1187 = vmatprep.subr.mxu0 %v1130_v26  ;;  %v1368_v26 = vld [vmem:[%s3070_s8 + $0x198] sm:$0xff] }
 0x1fa   : > { %1188 = vmatpush1.msra.mxu0 %v1129_v27  ;;  %v1367_v27 = vld [vmem:[%s3070_s8 + $0x190] sm:$0xff] }
 0x1fb   : > { %1189 = vmatprep.subr.mxu0 %v1128_v28  ;;  %v1366_v28 = vld [vmem:[%s3070_s8 + $0x188] sm:$0xff] }
 0x1fc   : > { %1190 = vmatpush1.msra.mxu0 %v1127_v29  ;;  %v1365_v29 = vld [vmem:[%s3070_s8 + $0x180] sm:$0xff] }
 0x1fd   : > { %1393 = vmatprep.subr.mxu0 %v1348_v30  ;;  %v1364_v30 = vld [vmem:[%s3070_s8 + $0x178] sm:$0xff] }
 0x289   : > { %v2058_v32 = vpop.f32.mrf.mxu1 }
 0x28b   : > { %v1084_v37 = vpop.f32.mrf.mxu1 }
 0x29d   : > { %v1930_v31 = vpop.f32.mrf.mxu0 }
 0x29f   : > { %v1931_v33 = vpop.f32.mrf.mxu0 }
 0x2a0   : > { %v1932_v35 = vadd.f32 %v1931_v33, %v1930_v31  ;;  %v1363_v31 = vld [vmem:[%s3070_s8 + $0x170] sm:$0xff]  ;;  %v1361_v33 = vld [vmem:[%s3070_s8 + $0x160] sm:$0xff] }
 0x2a1   : > { %v1933_v36 = vpop.f32.mrf.mxu0 }
 0x2a2   : > { %v1010_v38 = vadd.f32 %v1932_v35, %v1876_v34  ;;  %v1359_v35 = vld [vmem:[%s3070_s8 + $0x150] sm:$0xff] }
 0x2a3   : > { %v1934_v39 = vpop.f32.mrf.mxu0 }
 0x2a4   : > { %v1085_v40 = vadd.f32 %v1084_v37, %v1010_v38  ;;  %v1935_v41 = vadd.f32 %v1934_v39, %v1933_v36  ;;  %v1358_v36 = vld [vmem:[%s3070_s8 + $0x148] sm:$0xff]  ;;  %v1357_v37 = vld [vmem:[%s3070_s8 + $0x140] sm:$0xff]  ;;  %v1356_v38 = vld [vmem:[%s3070_s8 + $0x138] sm:$0xff] }
 0x2a5   : > { %v1355_v39 = vld [vmem:[%s3070_s8 + $0x130] sm:$0xff] }
 0x2a6   : > { %2154 = vtanh.f32 %v1085_v40  ;;  %v1015_v42 = vadd.f32 %v1935_v41, %v1876_v34  ;;  %v1360_v34 = vld [vmem:[%s3070_s8 + $0x158] sm:$0xff]  ;;  %v1354_v40 = vld [vmem:[%s3070_s8 + $0x128] sm:$0xff]  ;;  %v1353_v41 = vld [vmem:[%s3070_s8 + $0x120] sm:$0xff] }
 0x2a8   : > { %v1090_v43 = vadd.f32 %v2058_v32, %v1015_v42  ;;  %v1362_v32 = vld [vmem:[%s3070_s8 + $0x168] sm:$0xff]  ;;  %v1352_v42 = vld [vmem:[%s3070_s8 + $0x118] sm:$0xff] }
 0x2aa   : > { %2156 = vtanh.f32 %v1090_v43  ;;  %v1351_v43 = vld [vmem:[%s3070_s8 + $0x110] sm:$0xff] }
 0x2b3   : > { %v2155_v44 = vpop.eup %2154 }
 0x2b4   : > { %1295 = vmatmul.mubr.f32.vlgmr.msra.gmra.mxu1 %v2155_v44  ;;  %v1350_v44 = vld [vmem:[%s3070_s8 + $0x108] sm:$0xff] }
 0x2b7   : > { %v2157_v46 = vpop.eup %2156 }
 0x2b8   : > { %1224 = vmatmul.mubr.f32.vlgmr.msra.gmra.mxu0 %v2157_v46  ;;  %v1497_v46 = vld [vmem:[#allocation8 + $0xf8] sm:$0xff] }
 0x2b9   : > { %1394 = vmatpush1.msra.mxu0 %v1347_v45  ;;  %v1349_v45 = vld [vmem:[%s3070_s8 + $0x100] sm:$0xff]  ;;  %1542 = vmatprep.subr.mxu1 %v1497_v46 }
 0x2ba   : > { %1395 = vmatprep.subr.mxu0 %v1346_v47  ;;  %v1496_v47 = vld [vmem:[#allocation8 + $0xf0] sm:$0xff] }
 0x2bb   : > { %1396 = vmatpush1.msra.mxu0 %v1345_v56  ;;  %v1495_v56 = vld [vmem:[#allocation8 + $0xe8] sm:$0xff]  ;;  %1543 = vmatpush1.msra.mxu1 %v1496_v47 }
 0x2bc   : > { %1397 = vmatprep.subr.mxu0 %v1344_v48  ;;  %v1494_v48 = vld [vmem:[#allocation8 + $0xe0] sm:$0xff]  ;;  %1544 = vmatprep.subr.mxu1 %v1495_v56 }
 0x2bd   : > { %1398 = vmatpush1.msra.mxu0 %v1343_v49  ;;  %v1493_v49 = vld [vmem:[#allocation8 + $0xd8] sm:$0xff]  ;;  %1545 = vmatpush1.msra.mxu1 %v1494_v48 }
 0x2be   : > { %1399 = vmatprep.subr.mxu0 %v1342_v51  ;;  %v1492_v51 = vld [vmem:[#allocation8 + $0xd0] sm:$0xff]  ;;  %1546 = vmatprep.subr.mxu1 %v1493_v49 }
 0x2bf   : > { %1400 = vmatpush1.msra.mxu0 %v1341_v52  ;;  %v1491_v52 = vld [vmem:[#allocation8 + $0xc8] sm:$0xff]  ;;  %1547 = vmatpush1.msra.mxu1 %v1492_v51 }
 0x2c0   : > { %1401 = vmatprep.subr.mxu0 %v1340_v50  ;;  %v1490_v50 = vld [vmem:[#allocation8 + $0xc0] sm:$0xff]  ;;  %1548 = vmatprep.subr.mxu1 %v1491_v52 }
 0x2c1   : > { %1402 = vmatpush1.msra.mxu0 %v1339_v53  ;;  %v1489_v53 = vld [vmem:[#allocation8 + $0xb8] sm:$0xff]  ;;  %1549 = vmatpush1.msra.mxu1 %v1490_v50 }
 0x2c2   : > { %1403 = vmatprep.subr.mxu0 %v1338_v54  ;;  %v1488_v54 = vld [vmem:[#allocation8 + $0xb0] sm:$0xff]  ;;  %1550 = vmatprep.subr.mxu1 %v1489_v53  ;;  %v1505_v53 = vld [vmem:[#allocation8 + $0x138] sm:$0xff] }
 0x2c3   : > { %1404 = vmatpush1.msra.mxu0 %v1337_v55  ;;  %v1487_v55 = vld [vmem:[#allocation8 + $0xa8] sm:$0xff]  ;;  %1551 = vmatpush1.msra.mxu1 %v1488_v54  ;;  %v1504_v54 = vld [vmem:[#allocation8 + $0x130] sm:$0xff] }
 0x2c4   : > { %1405 = vmatprep.subr.mxu0 %v1336_v57  ;;  %v1486_v57 = vld [vmem:[#allocation8 + $0xa0] sm:$0xff]  ;;  %1552 = vmatprep.subr.mxu1 %v1487_v55  ;;  %v1503_v55 = vld [vmem:[#allocation8 + $0x128] sm:$0xff] }
 0x2c5   : > { %1406 = vmatpush1.msra.mxu0 %v1335_v58  ;;  %v1485_v58 = vld [vmem:[#allocation8 + $0x98] sm:$0xff]  ;;  %1553 = vmatpush1.msra.mxu1 %v1486_v57  ;;  %v1502_v57 = vld [vmem:[#allocation8 + $0x120] sm:$0xff] }
 0x2c6   : > { %1407 = vmatprep.subr.mxu0 %v1334_v59  ;;  %v1484_v59 = vld [vmem:[#allocation8 + $0x90] sm:$0xff]  ;;  %1554 = vmatprep.subr.mxu1 %v1485_v58  ;;  %v1501_v58 = vld [vmem:[#allocation8 + $0x118] sm:$0xff] }
 0x2c7   : > { %1408 = vmatpush1.msra.mxu0 %v1333_v60  ;;  %v1483_v60 = vld [vmem:[#allocation8 + $0x88] sm:$0xff]  ;;  %1555 = vmatpush1.msra.mxu1 %v1484_v59  ;;  %v1500_v59 = vld [vmem:[#allocation8 + $0x110] sm:$0xff] }
 0x2c8   : > { %1409 = vmatprep.subr.mxu0 %v1332_v61  ;;  %v1482_v61 = vld [vmem:[#allocation8 + $0x80] sm:$0xff]  ;;  %1556 = vmatprep.subr.mxu1 %v1483_v60  ;;  %v1499_v60 = vld [vmem:[#allocation8 + $0x108] sm:$0xff] }
 0x2c9   : > { %1410 = vmatpush1.msra.mxu0 %v1331_v62  ;;  %v1481_v62 = vld [vmem:[#allocation8 + $0x78] sm:$0xff]  ;;  %1557 = vmatpush1.msra.mxu1 %v1482_v61  ;;  %v1498_v61 = vld [vmem:[#allocation8 + $0x100] sm:$0xff] }
 0x2ca   : > { %1411 = vmatprep.subr.mxu0 %v1330_v63  ;;  %v1480_v63 = vld [vmem:[#allocation8 + $0x70] sm:$0xff]  ;;  %1558 = vmatprep.subr.mxu1 %v1481_v62  ;;  %v1646_v62 = vld [vmem:[#allocation9 + $0xf8] sm:$0xff] }
 0x2cb   : > { %1412 = vmatpush1.msra.mxu0 %v1329_v0  ;;  %v1479_v0 = vld [vmem:[#allocation8 + $0x68] sm:$0xff]  ;;  %1559 = vmatpush1.msra.mxu1 %v1480_v63  ;;  %v1630_v63 = vld [vmem:[#allocation9 + $0x78] sm:$0xff] }
 0x2cc   : > { %1413 = vmatprep.subr.mxu0 %v1328_v1  ;;  %v1478_v1 = vld [vmem:[#allocation8 + $0x60] sm:$0xff]  ;;  %1560 = vmatprep.subr.mxu1 %v1479_v0  ;;  %v1645_v0 = vld [vmem:[#allocation9 + $0xf0] sm:$0xff] }
 0x2cd   : > { %1414 = vmatpush1.msra.mxu0 %v1327_v2  ;;  %v1477_v2 = vld [vmem:[#allocation8 + $0x58] sm:$0xff]  ;;  %1561 = vmatpush1.msra.mxu1 %v1478_v1  ;;  %v1629_v1 = vld [vmem:[#allocation9 + $0x70] sm:$0xff] }
 0x2ce   : > { %1415 = vmatprep.subr.mxu0 %v1326_v3  ;;  %v1476_v3 = vld [vmem:[#allocation8 + $0x50] sm:$0xff]  ;;  %1562 = vmatprep.subr.mxu1 %v1477_v2  ;;  %v1644_v2 = vld [vmem:[#allocation9 + $0xe8] sm:$0xff] }
 0x2cf   : > { %1416 = vmatpush1.msra.mxu0 %v1325_v5  ;;  %v1475_v5 = vld [vmem:[#allocation8 + $0x48] sm:$0xff]  ;;  %1563 = vmatpush1.msra.mxu1 %v1476_v3 }
 0x2d0   : > { %1417 = vmatprep.subr.mxu0 %v1324_v6  ;;  %v1474_v6 = vld [vmem:[#allocation8 + $0x40] sm:$0xff]  ;;  %1564 = vmatprep.subr.mxu1 %v1475_v5  ;;  %v1628_v3 = vld [vmem:[#allocation9 + $0x68] sm:$0xff] }
 0x2d1   : > { %1418 = vmatpush1.msra.mxu0 %v1323_v7  ;;  %v1473_v7 = vld [vmem:[#allocation8 + $0x38] sm:$0xff]  ;;  %1565 = vmatpush1.msra.mxu1 %v1474_v6  ;;  %v1643_v5 = vld [vmem:[#allocation9 + $0xe0] sm:$0xff] }
 0x2d2   : > { %1419 = vmatprep.subr.mxu0 %v1322_v8  ;;  %v1472_v8 = vld [vmem:[#allocation8 + $0x30] sm:$0xff]  ;;  %1566 = vmatprep.subr.mxu1 %v1473_v7  ;;  %v1627_v6 = vld [vmem:[#allocation9 + $0x60] sm:$0xff]  ;;  %v1642_v7 = vld [vmem:[#allocation9 + $0xd8] sm:$0xff] }
 0x2d3   : > { %1420 = vmatpush1.msra.mxu0 %v1321_v9  ;;  %v1471_v9 = vld [vmem:[#allocation8 + $0x28] sm:$0xff]  ;;  %1567 = vmatpush1.msra.mxu1 %v1472_v8  ;;  %v1626_v8 = vld [vmem:[#allocation9 + $0x58] sm:$0xff] }
 0x2d4   : > { %1421 = vmatprep.subr.mxu0 %v1320_v10  ;;  %v1470_v10 = vld [vmem:[#allocation8 + $0x20] sm:$0xff]  ;;  %1568 = vmatprep.subr.mxu1 %v1471_v9  ;;  %v1641_v9 = vld [vmem:[#allocation9 + $0xd0] sm:$0xff] }
 0x2d5   : > { %1422 = vmatpush1.msra.mxu0 %v1319_v11  ;;  %v1469_v11 = vld [vmem:[#allocation8 + $0x18] sm:$0xff]  ;;  %1569 = vmatpush1.msra.mxu1 %v1470_v10  ;;  %v1625_v10 = vld [vmem:[#allocation9 + $0x50] sm:$0xff] }
 0x2d6   : > { %1423 = vmatprep.subr.mxu0 %v1318_v12  ;;  %v1468_v12 = vld [vmem:[#allocation8 + $0x10] sm:$0xff]  ;;  %1570 = vmatprep.subr.mxu1 %v1469_v11  ;;  %v1640_v11 = vld [vmem:[#allocation9 + $0xc8] sm:$0xff] }
 0x2d7   : > { %1424 = vmatpush1.msra.mxu0 %v1317_v13  ;;  %v1467_v13 = vld [vmem:[#allocation8 + $0x8] sm:$0xff]  ;;  %1571 = vmatpush1.msra.mxu1 %v1468_v12 }
 0x2d8   : > { %1425 = vmatprep.subr.mxu0 %v1380_v14  ;;  %v1466_v14 = vld [vmem:[#allocation8] sm:$0xff]  ;;  %1572 = vmatprep.subr.mxu1 %v1467_v13  ;;  %v1624_v12 = vld [vmem:[#allocation9 + $0x48] sm:$0xff] }
 0x2d9   : > { %1426 = vmatpush2.msra.mxu0 %v1379_v15  ;;  %v1529_v15 = vld [vmem:[#allocation8 + $0x1f8] sm:$0xff]  ;;  %1573 = vmatpush1.msra.mxu1 %v1466_v14  ;;  %v1639_v13 = vld [vmem:[#allocation9 + $0xc0] sm:$0xff] }
 0x2da   : > { %1427 = vmatprep.subr.mxu0 %v1378_v16  ;;  %v1528_v16 = vld [vmem:[#allocation8 + $0x1f0] sm:$0xff]  ;;  %1574 = vmatprep.subr.mxu1 %v1529_v15  ;;  %v1623_v14 = vld [vmem:[#allocation9 + $0x40] sm:$0xff]  ;;  %v1638_v15 = vld [vmem:[#allocation9 + $0xb8] sm:$0xff] }
 0x2db   : > { %1428 = vmatpush2.msra.mxu0 %v1377_v17  ;;  %v1527_v17 = vld [vmem:[#allocation8 + $0x1e8] sm:$0xff]  ;;  %1575 = vmatpush2.msra.mxu1 %v1528_v16  ;;  %v1622_v16 = vld [vmem:[#allocation9 + $0x38] sm:$0xff] }
 0x2dc   : > { %1429 = vmatprep.subr.mxu0 %v1376_v18  ;;  %v1526_v18 = vld [vmem:[#allocation8 + $0x1e0] sm:$0xff]  ;;  %1576 = vmatprep.subr.mxu1 %v1527_v17  ;;  %v1637_v17 = vld [vmem:[#allocation9 + $0xb0] sm:$0xff] }
 0x2dd   : > { %1430 = vmatpush2.msra.mxu0 %v1375_v19  ;;  %v1525_v19 = vld [vmem:[#allocation8 + $0x1d8] sm:$0xff]  ;;  %1577 = vmatpush2.msra.mxu1 %v1526_v18  ;;  %v1621_v18 = vld [vmem:[#allocation9 + $0x30] sm:$0xff] }
 0x2de   : > { %1431 = vmatprep.subr.mxu0 %v1374_v20  ;;  %v1524_v20 = vld [vmem:[#allocation8 + $0x1d0] sm:$0xff]  ;;  %1578 = vmatprep.subr.mxu1 %v1525_v19  ;;  %v1636_v19 = vld [vmem:[#allocation9 + $0xa8] sm:$0xff] }
 0x2df   : > { %1432 = vmatpush2.msra.mxu0 %v1373_v21  ;;  %v1523_v21 = vld [vmem:[#allocation8 + $0x1c8] sm:$0xff]  ;;  %1579 = vmatpush2.msra.mxu1 %v1524_v20 }
 0x2e0   : > { %1433 = vmatprep.subr.mxu0 %v1372_v22  ;;  %v1522_v22 = vld [vmem:[#allocation8 + $0x1c0] sm:$0xff]  ;;  %1580 = vmatprep.subr.mxu1 %v1523_v21  ;;  %v1620_v20 = vld [vmem:[#allocation9 + $0x28] sm:$0xff] }
 0x2e1   : > { %1434 = vmatpush2.msra.mxu0 %v1371_v23  ;;  %v1521_v23 = vld [vmem:[#allocation8 + $0x1b8] sm:$0xff]  ;;  %1581 = vmatpush2.msra.mxu1 %v1522_v22  ;;  %v1635_v21 = vld [vmem:[#allocation9 + $0xa0] sm:$0xff] }
 0x2e2   : > { %1435 = vmatprep.subr.mxu0 %v1370_v24  ;;  %v1520_v24 = vld [vmem:[#allocation8 + $0x1b0] sm:$0xff]  ;;  %1582 = vmatprep.subr.mxu1 %v1521_v23  ;;  %v1619_v22 = vld [vmem:[#allocation9 + $0x20] sm:$0xff] }
 0x2e3   : > { %1436 = vmatpush2.msra.mxu0 %v1369_v25  ;;  %v1519_v25 = vld [vmem:[#allocation8 + $0x1a8] sm:$0xff]  ;;  %1583 = vmatpush2.msra.mxu1 %v1520_v24  ;;  %v1381_v23 = vld [vmem:[%s3071_s9] sm:$0x3] }
 0x2e4   : > { %1437 = vmatprep.subr.mxu0 %v1368_v26  ;;  %v1518_v26 = vld [vmem:[#allocation8 + $0x1a0] sm:$0xff]  ;;  %1584 = vmatprep.subr.mxu1 %v1519_v25 }
 0x2e5   : > { %1438 = vmatpush2.msra.mxu0 %v1367_v27  ;;  %v1517_v27 = vld [vmem:[#allocation8 + $0x198] sm:$0xff]  ;;  %1585 = vmatpush2.msra.mxu1 %v1518_v26 }
 0x2e6   : > { %1439 = vmatprep.subr.mxu0 %v1366_v28  ;;  %v1516_v28 = vld [vmem:[#allocation8 + $0x190] sm:$0xff]  ;;  %1586 = vmatprep.subr.mxu1 %v1517_v27 }
 0x2e7   : > { %1440 = vmatpush2.msra.mxu0 %v1365_v29  ;;  %v1515_v29 = vld [vmem:[#allocation8 + $0x188] sm:$0xff]  ;;  %1587 = vmatpush2.msra.mxu1 %v1516_v28 }
 0x2e8   : > { %1441 = vmatprep.subr.mxu0 %v1364_v30  ;;  %v1514_v30 = vld [vmem:[#allocation8 + $0x180] sm:$0xff]  ;;  %1588 = vmatprep.subr.mxu1 %v1515_v29 }
 0x2e9   : > { %1442 = vmatpush2.msra.mxu0 %v1363_v31  ;;  %v1513_v31 = vld [vmem:[#allocation8 + $0x178] sm:$0xff]  ;;  %1589 = vmatpush2.msra.mxu1 %v1514_v30 }
 0x2ea   : > { %1443 = vmatprep.subr.mxu0 %v1362_v32  ;;  %v1512_v32 = vld [vmem:[#allocation8 + $0x170] sm:$0xff]  ;;  %1590 = vmatprep.subr.mxu1 %v1513_v31 }
 0x2eb   : > { %1444 = vmatpush2.msra.mxu0 %v1361_v33  ;;  %v1511_v33 = vld [vmem:[#allocation8 + $0x168] sm:$0xff]  ;;  %1591 = vmatpush2.msra.mxu1 %v1512_v32  ;;  %v1634_v32 = vld [vmem:[#allocation9 + $0x98] sm:$0xff] }
 0x2ec   : > { %1445 = vmatprep.subr.mxu0 %v1360_v34  ;;  %v1510_v34 = vld [vmem:[#allocation8 + $0x160] sm:$0xff]  ;;  %1592 = vmatprep.subr.mxu1 %v1511_v33  ;;  %v1618_v33 = vld [vmem:[#allocation9 + $0x18] sm:$0xff] }
 0x2ed   : > { %1446 = vmatpush2.msra.mxu0 %v1359_v35  ;;  %v1509_v35 = vld [vmem:[#allocation8 + $0x158] sm:$0xff]  ;;  %1593 = vmatpush2.msra.mxu1 %v1510_v34  ;;  %v1633_v34 = vld [vmem:[#allocation9 + $0x90] sm:$0xff] }
 0x2ee   : > { %1447 = vmatprep.subr.mxu0 %v1358_v36  ;;  %v1508_v36 = vld [vmem:[#allocation8 + $0x150] sm:$0xff]  ;;  %1594 = vmatprep.subr.mxu1 %v1509_v35 }
 0x2ef   : > { %1448 = vmatpush2.msra.mxu0 %v1357_v37  ;;  %v1507_v37 = vld [vmem:[#allocation8 + $0x148] sm:$0xff]  ;;  %1595 = vmatpush2.msra.mxu1 %v1508_v36  ;;  %v1617_v35 = vld [vmem:[#allocation9 + $0x10] sm:$0xff] }
 0x2f0   : > { %1449 = vmatprep.subr.mxu0 %v1356_v38  ;;  %v1506_v38 = vld [vmem:[#allocation8 + $0x140] sm:$0xff]  ;;  %1596 = vmatprep.subr.mxu1 %v1507_v37  ;;  %v1632_v36 = vld [vmem:[#allocation9 + $0x88] sm:$0xff] }
 0x2f1   : > { %1450 = vmatpush2.msra.mxu0 %v1355_v39  ;;  %1597 = vmatpush2.msra.mxu1 %v1506_v38  ;;  %v1304_v39 = vshrl.u32 %v627_v4, 7  ;;  %v1616_v37 = vld [vmem:[#allocation9 + $0x8] sm:$0xff]  ;;  %v1631_v38 = vld [vmem:[#allocation9 + $0x80] sm:$0xff] }
 0x2f2   : > { %1451 = vmatprep.subr.mxu0 %v1354_v40  ;;  %1598 = vmatprep.subr.mxu1 %v1505_v53 }
 0x2f3   : > { %1452 = vmatpush2.msra.mxu0 %v1353_v41  ;;  %v3029_v40 = vsub.s32 0, %v1304_v39  ;;  %v1301_v41 = vld [vmem:[%s3069_s7] sm:$0x3]  ;;  %1599 = vmatpush2.msra.mxu1 %v1504_v54 }
 0x2f4   : > { %1453 = vmatprep.subr.mxu0 %v1352_v42  ;;  %v3034_v42 = vsub.s32 1, %v1304_v39  ;;  %1600 = vmatprep.subr.mxu1 %v1503_v55  ;;  %v1615_v39 = vld [vmem:[#allocation9] sm:$0xff] }
 0x2f5   : > { %1454 = vmatpush2.msra.mxu0 %v1351_v43  ;;  %1601 = vmatpush2.msra.mxu1 %v1502_v57  ;;  %v1386_v24 = vrot.slane %v1381_v23, %v3029_v40 }
 0x2f6   : > { %1455 = vmatprep.subr.mxu0 %v1350_v44  ;;  %v1310_v47 = vrot.slane %v1301_v41, %v3034_v42  ;;  %1602 = vmatprep.subr.mxu1 %v1501_v58  ;;  %v1390_v25 = vrot.slane %v1381_v23, %v3034_v42 }
 0x2f7   : > { %1456 = vmatpush2.msra.mxu0 %v1349_v45  ;;  %v1306_v45 = vrot.slane %v1301_v41, %v3029_v40  ;;  %1603 = vmatpush2.msra.mxu1 %v1500_v59  ;;  %v1530_v41 = vld [vmem:[%s3073_s11] sm:$0x3] }
 0x2f8   : > { %1604 = vmatprep.subr.mxu1 %v1499_v60  ;;  %1954 = vmatprep.subr.mxu0 %v1646_v62 }
 0x2f9   : > { %1605 = vmatpush2.msra.mxu1 %v1498_v61 }
 0x374   : > { %v1296_v43 = vpop.f32.mrf.mxu1 }
 0x376   : > { %v1298_v56 = vpop.f32.mrf.mxu1 }
 0x378   : > { %v1225_v44 = vpop.f32.mrf.mxu0 }
 0x379   : > { %v1297_v46 = vadd.f32 %v1296_v43, %v1225_v44  ;;  %v1535_v43 = vrot.slane %v1530_v41, %v3029_v40  ;;  %v1539_v44 = vrot.slane %v1530_v41, %v3034_v42 }
 0x37a   : > { %v1227_v48 = vpop.f32.mrf.mxu0 }
 0x37b   : > { %v1299_v49 = vadd.f32 %v1298_v56, %v1227_v48  ;;  %v1313_v51 = vadd.f32 %v1306_v45, %v1297_v46 }
 0x37d   : > { %v1314_v4 = vadd.f32 %v1310_v47, %v1299_v49  ;;  %v1315_v50 = vmax.f32 %v1313_v51, 0.0 }
 0x37f   : > { %v1316_v52 = vmax.f32 %v1314_v4, 0.0  ;;  %v1877_v4 = vld [vmem:[%s3075_s13] ss:$0 sm:$0xff] }
 0x381   : > { %1457 = vmatprep.mubr.f32.mxu0 %v1316_v52 }
 0x382   : > { %1458 = vmatmul.mubr.f32.vlgmr.msra.gmra.mxu0 %v1315_v50 }
 0x383   : > { %1955 = vmatpush3.msra.mxu0 %v1630_v63 }
 0x384   : > { %1956 = vmatprep.subr.mxu0 %v1645_v0 }
 0x385   : > { %1957 = vmatpush3.msra.mxu0 %v1629_v1 }
 0x386   : > { %1958 = vmatprep.subr.mxu0 %v1644_v2 }
 0x387   : > { %1959 = vmatpush3.msra.mxu0 %v1628_v3 }
 0x388   : > { %1960 = vmatprep.subr.mxu0 %v1643_v5 }
 0x389   : > { %1961 = vmatpush3.msra.mxu0 %v1627_v6 }
 0x38a   : > { %1962 = vmatprep.subr.mxu0 %v1642_v7 }
 0x38b   : > { %1963 = vmatpush3.msra.mxu0 %v1626_v8 }
 0x38c   : > { %1964 = vmatprep.subr.mxu0 %v1641_v9 }
 0x38d   : > { %1965 = vmatpush3.msra.mxu0 %v1625_v10 }
 0x38e   : > { %1966 = vmatprep.subr.mxu0 %v1640_v11 }
 0x38f   : > { %1967 = vmatpush3.msra.mxu0 %v1624_v12 }
 0x390   : > { %1968 = vmatprep.subr.mxu0 %v1639_v13 }
 0x391   : > { %1969 = vmatpush3.msra.mxu0 %v1623_v14 }
 0x392   : > { %1970 = vmatprep.subr.mxu0 %v1638_v15 }
 0x393   : > { %1971 = vmatpush3.msra.mxu0 %v1622_v16 }
 0x394   : > { %1972 = vmatprep.subr.mxu0 %v1637_v17 }
 0x395   : > { %1973 = vmatpush3.msra.mxu0 %v1621_v18 }
 0x396   : > { %1974 = vmatprep.subr.mxu0 %v1636_v19 }
 0x397   : > { %1975 = vmatpush3.msra.mxu0 %v1620_v20 }
 0x398   : > { %1976 = vmatprep.subr.mxu0 %v1635_v21 }
 0x399   : > { %1977 = vmatpush3.msra.mxu0 %v1619_v22 }
 0x39a   : > { %1978 = vmatprep.subr.mxu0 %v1634_v32 }
 0x39b   : > { %1979 = vmatpush3.msra.mxu0 %v1618_v33 }
 0x39c   : > { %1980 = vmatprep.subr.mxu0 %v1633_v34 }
 0x39d   : > { %1981 = vmatpush3.msra.mxu0 %v1617_v35 }
 0x39e   : > { %1982 = vmatprep.subr.mxu0 %v1632_v36 }
 0x39f   : > { %1983 = vmatpush3.msra.mxu0 %v1616_v37 }
 0x3a0   : > { %1984 = vmatprep.subr.mxu0 %v1631_v38 }
 0x3a1   : > { %1985 = vmatpush3.msra.mxu0 %v1615_v39 }
 0x442   : > { %v1459_v26 = vpop.f32.mrf.mxu0 }
 0x443   : > { %v1460_v27 = vadd.f32 %v1459_v26, %v1386_v24 }
 0x444   : > { %v1461_v28 = vpop.f32.mrf.mxu0 }
 0x445   : > { %v1462_v29 = vadd.f32 %v1461_v28, %v1390_v25  ;;  %v1464_v31 = vmax.f32 %v1460_v27, 0.0 }
 0x447   : > { %v1465_v30 = vmax.f32 %v1462_v29, 0.0 }
 0x449   : > { %1606 = vmatprep.mubr.f32.mxu1 %v1465_v30 }
 0x44a   : > { %1607 = vmatmul.mubr.f32.vlgmr.msra.gmra.mxu1 %v1464_v31 }
 0x50a   : > { %v1608_v45 = vpop.f32.mrf.mxu1 }
 0x50b   : > { %v1609_v46 = vadd.f32 %v1608_v45, %v1535_v43 }
 0x50c   : > { %v1610_v47 = vpop.f32.mrf.mxu1 }
 0x50d   : > { %v1611_v56 = vadd.f32 %v1610_v47, %v1539_v44  ;;  %v1613_v49 = vmax.f32 %v1609_v46, 0.0 }
 0x50f   : > { %v1614_v48 = vmax.f32 %v1611_v56, 0.0 }
 0x511   : > { %1718 = vmatprep.mubr.f32.mxu0 %v1614_v48 }
 0x512   : > { %1719 = vmatmul.mubr.f32.vlgmr.msra.gmra.mxu0 %v1613_v49 }
 0x5d2   : > { %v1986_v51 = vpop.f32.mrf.mxu0 }
 0x5d4   : > { %v1987_v52 = vpop.f32.mrf.mxu0 }
 0x5d5   : > { %v1988_v50 = vadd.f32 %v1987_v52, %v1986_v51 }
 0x5d7   : > { %v1721_v53 = vadd.f32 %v1988_v50, %v1877_v4 }
 0x5d9   : > { %1724 = vst [vmem:[%s2540_s25] sm:$0xff] %v1721_v53 }
 0x5da PF: > { %s3096_s15 = sld [smem:[#allocation14_spill]]  ;;  %s3098_s29 = smov %s2304_s30 }
 0x5db   : > { %s3097_s24 = sld [smem:[#allocation15_spill]] }
 0x5e0   : > { %p24_p7 = scmp.ge.s32.totalorder %s3096_s15, 4  }
 0x5e1   : > { %s3099_s30 = smov %s3097_s24 }
 0x5e2   :  { %26 = sbr.rel (!%p24_p7) target bundleno = 7 (0x7), region = 230 }
 0x5e7   :  { %1744 = vsyncpa [#allocation5], 1 }
 0x5e8   :  { %1746 = vsyncpa [#allocation5 + $0x1], 1 }
 0x5e9   :  { %1747 = vsyncpa [#allocation7], 1 }
 0x5ea   :  { %1748 = vsyncpa [#allocation10], 1 }

</bundles_post_ra>
